<compile_context>
chip_gen: v6e
topology: v6e:2x2x1
jax: 0.10.0
libtpu: 0.0.40
codegen_flags: <defaults>
</compile_context>

<pallas_src>
import functools
import math

import jax
import jax.numpy as jnp
from jax.experimental import pallas as pl
from jax.experimental.pallas import tpu as pltpu


def _round_up(n, m):
    return ((n + m - 1) // m) * m


def _atoms_pad(num_atoms):
    return _round_up(num_atoms, 64)


# --------------------------------------------------------------------------- #
# Kernel
# --------------------------------------------------------------------------- #
def _rainbow_kernel(x_ref, w_ref, b_ref, out_ref, *, num_actions, num_atoms,
                    atoms_pad):
    # x_ref:   [bb, D]                (features zero-padded to D lanes)
    # w_ref:   [4, D, D]              packed block-diagonal weights
    # b_ref:   [4, 1, D]              packed biases
    # out_ref: [num_actions, bb, atoms_pad]  per-action softmax over atoms
    h = x_ref[...]

    # Trunk: linear1, linear2, fused (noisy_value1 | noisy_advantage1), all ReLU.
    for l in range(3):
        z = jnp.dot(h, w_ref[l], preferred_element_type=jnp.float32) + b_ref[l]
        h = jnp.maximum(z, 0.0)

    # Block-diagonal head: value-hidden rows feed slot 0, advantage-hidden rows
    # feed slots 1..A (one atoms_pad-wide slot per action).
    head = jnp.dot(h, w_ref[3], preferred_element_type=jnp.float32) + b_ref[3]

    value = head[:, 0:atoms_pad]                                   # [bb, ap]
    advs = [head[:, (1 + a) * atoms_pad:(2 + a) * atoms_pad]
            for a in range(num_actions)]

    adv_mean = advs[0]
    for a in range(1, num_actions):
        adv_mean = adv_mean + advs[a]
    adv_mean = adv_mean * (1.0 / num_actions)          # mean over ACTIONS, per sample/atom

    lane = jax.lax.broadcasted_iota(jnp.int32, (value.shape[0], atoms_pad), 1)
    valid = lane < num_atoms                            # mask padded atom lanes

    for a in range(num_actions):
        q = value + advs[a] - adv_mean                  # [bb, ap]
        q = jnp.where(valid, q, -1e30)
        q = q - jnp.max(q, axis=-1, keepdims=True)
        e = jnp.where(valid, jnp.exp(q), 0.0)
        out_ref[a] = e / jnp.sum(e, axis=-1, keepdims=True)


# --------------------------------------------------------------------------- #
# Wrapper
# --------------------------------------------------------------------------- #
@functools.partial(jax.jit, static_argnames=("num_actions", "num_atoms"))
def rainbow_forward(x, w_pack, b_pack, *, num_actions, num_atoms):
    """x: [B, num_inputs] f32.  Returns [B, num_actions, num_atoms] distributions."""
    B, num_inputs = x.shape
    D = w_pack.shape[-1]
    ap = _atoms_pad(num_atoms)

    B_pad = _round_up(max(B, 8), 8)
    x_pad = jnp.zeros((B_pad, D), jnp.float32).at[:B, :num_inputs].set(
        x.astype(jnp.float32))

    # Grid over batch (parallel) so large batches shard across v7x's 2 TCs;
    # tiny batches get a grid of 1 (no extra per-step overhead).
    bb = 128 if (B_pad > 128 and B_pad % 128 == 0) else B_pad
    grid = (B_pad // bb,)

    kernel = functools.partial(_rainbow_kernel, num_actions=num_actions,
                               num_atoms=num_atoms, atoms_pad=ap)
    out = pl.pallas_call(
        kernel,
        out_shape=jax.ShapeDtypeStruct((num_actions, B_pad, ap), jnp.float32),
        grid=grid,
        in_specs=[
            pl.BlockSpec((bb, D), lambda i: (i, 0)),
            pl.BlockSpec((4, D, D), lambda i: (0, 0, 0)),
            pl.BlockSpec((4, 1, D), lambda i: (0, 0, 0)),
        ],
        out_specs=pl.BlockSpec((num_actions, bb, ap), lambda i: (0, i, 0)),
        compiler_params=pltpu.CompilerParams(dimension_semantics=("parallel",)),
    )(x_pad, w_pack, b_pack)

    # [A, B_pad, ap] -> [B, A, num_atoms]  (layout plumbing outside the kernel).
    return jnp.transpose(out, (1, 0, 2))[:B, :, :num_atoms]


# --------------------------------------------------------------------------- #
# Parameter construction (PyTorch-equivalent init), noise collapse, packing
# --------------------------------------------------------------------------- #
def _scale_noise(key, size):
    x = jax.random.normal(key, (size,), jnp.float32)
    return jnp.sign(x) * jnp.sqrt(jnp.abs(x))


def init_raw_params(key, num_inputs, num_actions, num_atoms, std_init=0.4):
    """Weights stored as [in, out] (transposed vs torch.nn.Linear)."""
    keys = iter(jax.random.split(key, 32))
    p = {}

    def linear(name, din, dout):
        bound = 1.0 / math.sqrt(din)
        p[f"{name}_w"] = jax.random.uniform(next(keys), (din, dout), jnp.float32,
                                            -bound, bound)
        p[f"{name}_b"] = jax.random.uniform(next(keys), (dout,), jnp.float32,
                                            -bound, bound)

    def noisy(name, din, dout):
        mu_range = 1.0 / math.sqrt(din)
        p[f"{name}_wmu"] = jax.random.uniform(next(keys), (din, dout), jnp.float32,
                                              -mu_range, mu_range)
        p[f"{name}_wsig"] = jnp.full((din, dout), std_init / math.sqrt(din),
                                     jnp.float32)
        p[f"{name}_bmu"] = jax.random.uniform(next(keys), (dout,), jnp.float32,
                                              -mu_range, mu_range)
        p[f"{name}_bsig"] = jnp.full((dout,), std_init / math.sqrt(dout),
                                     jnp.float32)
        eps_in = _scale_noise(next(keys), din)
        eps_out = _scale_noise(next(keys), dout)
        # torch: weight_epsilon = eps_out.ger(eps_in)  (shape [out, in]); in
        # [in, out] layout that is the outer product below.
        p[f"{name}_weps"] = eps_in[:, None] * eps_out[None, :]
        p[f"{name}_beps"] = _scale_noise(next(keys), dout)

    linear("linear1", num_inputs, 32)
    linear("linear2", 32, 64)
    noisy("noisy_value1", 64, 64)
    noisy("noisy_value2", 64, num_atoms)
    noisy("noisy_advantage1", 64, 64)
    noisy("noisy_advantage2", 64, num_actions * num_atoms)
    return p


def effective_weights(p, training=True):
    """Collapse NoisyLinear to dense weights: mu + sigma*eps (training) or mu
    (eval).  This is mathematically identical to the PyTorch forward, which
    calls F.linear with the combined weight; per-call noise resampling
    (reset_noise) is a host-side event, not part of the forward hot path."""
    eff = {"w1": p["linear1_w"], "b1": p["linear1_b"],
           "w2": p["linear2_w"], "b2": p["linear2_b"]}
    for short, name in (("v1", "noisy_value1"), ("v2", "noisy_value2"),
                        ("a1", "noisy_advantage1"), ("a2", "noisy_advantage2")):
        if training:
            eff[f"w{short}"] = p[f"{name}_wmu"] + p[f"{name}_wsig"] * p[f"{name}_weps"]
            eff[f"b{short}"] = p[f"{name}_bmu"] + p[f"{name}_bsig"] * p[f"{name}_beps"]
        else:
            eff[f"w{short}"] = p[f"{name}_wmu"]
            eff[f"b{short}"] = p[f"{name}_bmu"]
    return eff


def pack_params(eff, num_inputs, num_actions, num_atoms):
    """One-time prep: pack all six layers into one [4, D, D] weight slab and
    one [4, 1, D] bias slab (zero-padded, block-diagonal where fused)."""
    A, atoms = num_actions, num_atoms
    ap = _atoms_pad(atoms)
    D = _round_up(max(128, num_inputs, (1 + A) * ap), 128)

    w = jnp.zeros((4, D, D), jnp.float32)
    b = jnp.zeros((4, 1, D), jnp.float32)

    # layer 0: linear1  [num_inputs -> 32]
    w = w.at[0, :num_inputs, :32].set(eff["w1"])
    b = b.at[0, 0, :32].set(eff["b1"])
    # layer 1: linear2  [32 -> 64]
    w = w.at[1, :32, :64].set(eff["w2"])
    b = b.at[1, 0, :64].set(eff["b2"])
    # layer 2: fused noisy_value1 | noisy_advantage1  [64 -> 64 | 64]
    w = w.at[2, :64, :64].set(eff["wv1"])
    b = b.at[2, 0, :64].set(eff["bv1"])
    w = w.at[2, :64, 64:128].set(eff["wa1"])
    b = b.at[2, 0, 64:128].set(eff["ba1"])
    # layer 3: block-diagonal head. value-hidden rows 0:64 -> slot 0 (atoms),
    # advantage-hidden rows 64:128 -> slots 1..A (one ap-wide slot per action).
    w = w.at[3, :64, :atoms].set(eff["wv2"])
    b = b.at[3, 0, :atoms].set(eff["bv2"])
    for a in range(A):
        lo = (1 + a) * ap
        w = w.at[3, 64:128, lo:lo + atoms].set(eff["wa2"][:, a * atoms:(a + 1) * atoms])
        b = b.at[3, 0, lo:lo + atoms].set(eff["ba2"][a * atoms:(a + 1) * atoms])
    return w, b


# --------------------------------------------------------------------------- #
# Pure-JAX reference (unpacked weights) for verification
# --------------------------------------------------------------------------- #
def _reference(x, eff, num_actions, num_atoms):
    relu = jax.nn.relu
    h = relu(x @ eff["w1"] + eff["b1"])
    h = relu(h @ eff["w2"] + eff["b2"])
    v = relu(h @ eff["wv1"] + eff["bv1"])
    v = v @ eff["wv2"] + eff["bv2"]                      # [B, atoms]
    a = relu(h @ eff["wa1"] + eff["ba1"])
    a = a @ eff["wa2"] + eff["ba2"]                      # [B, A*atoms]
    B = x.shape[0]
    v = v.reshape(B, 1, num_atoms)
    a = a.reshape(B, num_actions, num_atoms)
    q = v + a - a.mean(axis=1, keepdims=True)            # mean over actions
    return jax.nn.softmax(q, axis=-1)                    # softmax over atoms


if __name__ == "__main__":
    NUM_INPUTS, NUM_ACTIONS, NUM_ATOMS = 8, 4, 51
    BATCH = 8

    key = jax.random.PRNGKey(0)
    k_x, k_p = jax.random.split(key)
    x = jax.random.normal(k_x, (BATCH, NUM_INPUTS), jnp.float32)

    raw = init_raw_params(k_p, NUM_INPUTS, NUM_ACTIONS, NUM_ATOMS)
    eff = effective_weights(raw, training=True)
    w_pack, b_pack = pack_params(eff, NUM_INPUTS, NUM_ACTIONS, NUM_ATOMS)

    out = rainbow_forward(x, w_pack, b_pack,
                          num_actions=NUM_ACTIONS, num_atoms=NUM_ATOMS)
    out = jax.block_until_ready(out)

    ref = _reference(x, eff, NUM_ACTIONS, NUM_ATOMS)
    assert out.shape == (BATCH, NUM_ACTIONS, NUM_ATOMS)
    assert jnp.allclose(out, ref, atol=1e-4, rtol=1e-4), "mismatch vs JAX reference"
    assert jnp.allclose(out.sum(-1), 1.0, atol=1e-4), "rows must sum to 1"

    print("KERNEL_OK")
</pallas_src>

<mosaic_0001>
module attributes {stable_mosaic.version = 11 : i64} {
  func.func @_rainbow_kernel(%arg0: i32, %arg1: memref<8x384xf32, #tpu.memory_space<vmem>>, %arg2: memref<4x384x384xf32, #tpu.memory_space<vmem>>, %arg3: memref<4x1x384xf32, #tpu.memory_space<vmem>>, %arg4: memref<4x8x64xf32, #tpu.memory_space<vmem>>) attributes {dimension_semantics = [#tpu.dimension_semantics<parallel>], iteration_bounds = array<i64: 1>, scalar_prefetch = 0 : i64, scratch_operands = 0 : i64, tpu.core_type = #tpu.core_type<tc>, window_params = [{transform_indices = @transform_0, window_bounds = array<i64: 8, 384>}, {pipeline_mode = #tpu.pipeline_mode<synchronous>, transform_indices = @transform_1, window_bounds = array<i64: 4, 384, 384>}, {pipeline_mode = #tpu.pipeline_mode<synchronous>, transform_indices = @transform_2, window_bounds = array<i64: 4, 1, 384>}, {transform_indices = @transform_3, window_bounds = array<i64: 4, 8, 64>}]} {
    %c0 = arith.constant 0 : index
    %c0_0 = arith.constant 0 : index
    %0 = vector.load %arg1[%c0, %c0_0] : memref<8x384xf32, #tpu.memory_space<vmem>>, vector<8x384xf32>
    %c0_1 = arith.constant 0 : index
    %c0_2 = arith.constant 0 : index
    %c0_3 = arith.constant 0 : index
    %1 = vector.load %arg2[%c0_1, %c0_2, %c0_3] : memref<4x384x384xf32, #tpu.memory_space<vmem>>, vector<1x384x384xf32>
    %2 = vector.shape_cast %1 : vector<1x384x384xf32> to vector<384x384xf32>
    %cst = arith.constant dense<0.000000e+00> : vector<8x384xf32>
    %3 = tpu.matmul %0, %2, %cst {dimension_numbers = #tpu.dot_dimension_numbers<[1], [0], [0], [1], [0, 0, 1, 1], [], []>} : vector<8x384xf32>, vector<384x384xf32>, vector<8x384xf32> -> vector<8x384xf32>
    %c0_4 = arith.constant 0 : index
    %c0_5 = arith.constant 0 : index
    %c0_6 = arith.constant 0 : index
    %4 = vector.load %arg3[%c0_4, %c0_5, %c0_6] : memref<4x1x384xf32, #tpu.memory_space<vmem>>, vector<1x1x384xf32>
    %5 = vector.shape_cast %4 : vector<1x1x384xf32> to vector<1x384xf32>
    %6 = vector.broadcast %5 : vector<1x384xf32> to vector<8x384xf32>
    %7 = arith.addf %3, %6 : vector<8x384xf32>
    %cst_7 = arith.constant 0.000000e+00 : f32
    %8 = vector.broadcast %cst_7 : f32 to vector<8x384xf32>
    %9 = arith.maximumf %7, %8 : vector<8x384xf32>
    %c1 = arith.constant 1 : index
    %c0_8 = arith.constant 0 : index
    %c0_9 = arith.constant 0 : index
    %10 = vector.load %arg2[%c1, %c0_8, %c0_9] : memref<4x384x384xf32, #tpu.memory_space<vmem>>, vector<1x384x384xf32>
    %11 = vector.shape_cast %10 : vector<1x384x384xf32> to vector<384x384xf32>
    %cst_10 = arith.constant dense<0.000000e+00> : vector<8x384xf32>
    %12 = tpu.matmul %9, %11, %cst_10 {dimension_numbers = #tpu.dot_dimension_numbers<[1], [0], [0], [1], [0, 0, 1, 1], [], []>} : vector<8x384xf32>, vector<384x384xf32>, vector<8x384xf32> -> vector<8x384xf32>
    %c1_11 = arith.constant 1 : index
    %c0_12 = arith.constant 0 : index
    %c0_13 = arith.constant 0 : index
    %13 = vector.load %arg3[%c1_11, %c0_12, %c0_13] : memref<4x1x384xf32, #tpu.memory_space<vmem>>, vector<1x1x384xf32>
    %14 = vector.shape_cast %13 : vector<1x1x384xf32> to vector<1x384xf32>
    %15 = vector.broadcast %14 : vector<1x384xf32> to vector<8x384xf32>
    %16 = arith.addf %12, %15 : vector<8x384xf32>
    %cst_14 = arith.constant 0.000000e+00 : f32
    %17 = vector.broadcast %cst_14 : f32 to vector<8x384xf32>
    %18 = arith.maximumf %16, %17 : vector<8x384xf32>
    %c2 = arith.constant 2 : index
    %c0_15 = arith.constant 0 : index
    %c0_16 = arith.constant 0 : index
    %19 = vector.load %arg2[%c2, %c0_15, %c0_16] : memref<4x384x384xf32, #tpu.memory_space<vmem>>, vector<1x384x384xf32>
    %20 = vector.shape_cast %19 : vector<1x384x384xf32> to vector<384x384xf32>
    %cst_17 = arith.constant dense<0.000000e+00> : vector<8x384xf32>
    %21 = tpu.matmul %18, %20, %cst_17 {dimension_numbers = #tpu.dot_dimension_numbers<[1], [0], [0], [1], [0, 0, 1, 1], [], []>} : vector<8x384xf32>, vector<384x384xf32>, vector<8x384xf32> -> vector<8x384xf32>
    %c2_18 = arith.constant 2 : index
    %c0_19 = arith.constant 0 : index
    %c0_20 = arith.constant 0 : index
    %22 = vector.load %arg3[%c2_18, %c0_19, %c0_20] : memref<4x1x384xf32, #tpu.memory_space<vmem>>, vector<1x1x384xf32>
    %23 = vector.shape_cast %22 : vector<1x1x384xf32> to vector<1x384xf32>
    %24 = vector.broadcast %23 : vector<1x384xf32> to vector<8x384xf32>
    %25 = arith.addf %21, %24 : vector<8x384xf32>
    %cst_21 = arith.constant 0.000000e+00 : f32
    %26 = vector.broadcast %cst_21 : f32 to vector<8x384xf32>
    %27 = arith.maximumf %25, %26 : vector<8x384xf32>
    %c3 = arith.constant 3 : index
    %c0_22 = arith.constant 0 : index
    %c0_23 = arith.constant 0 : index
    %28 = vector.load %arg2[%c3, %c0_22, %c0_23] : memref<4x384x384xf32, #tpu.memory_space<vmem>>, vector<1x384x384xf32>
    %29 = vector.shape_cast %28 : vector<1x384x384xf32> to vector<384x384xf32>
    %cst_24 = arith.constant dense<0.000000e+00> : vector<8x384xf32>
    %30 = tpu.matmul %27, %29, %cst_24 {dimension_numbers = #tpu.dot_dimension_numbers<[1], [0], [0], [1], [0, 0, 1, 1], [], []>} : vector<8x384xf32>, vector<384x384xf32>, vector<8x384xf32> -> vector<8x384xf32>
    %c3_25 = arith.constant 3 : index
    %c0_26 = arith.constant 0 : index
    %c0_27 = arith.constant 0 : index
    %31 = vector.load %arg3[%c3_25, %c0_26, %c0_27] : memref<4x1x384xf32, #tpu.memory_space<vmem>>, vector<1x1x384xf32>
    %32 = vector.shape_cast %31 : vector<1x1x384xf32> to vector<1x384xf32>
    %33 = vector.broadcast %32 : vector<1x384xf32> to vector<8x384xf32>
    %34 = arith.addf %30, %33 : vector<8x384xf32>
    %35 = vector.extract_strided_slice %34 {offsets = [0, 0], sizes = [8, 64], strides = [1, 1]} : vector<8x384xf32> to vector<8x64xf32>
    %36 = vector.extract_strided_slice %34 {offsets = [0, 64], sizes = [8, 64], strides = [1, 1]} : vector<8x384xf32> to vector<8x64xf32>
    %37 = vector.extract_strided_slice %34 {offsets = [0, 128], sizes = [8, 64], strides = [1, 1]} : vector<8x384xf32> to vector<8x64xf32>
    %38 = vector.extract_strided_slice %34 {offsets = [0, 192], sizes = [8, 64], strides = [1, 1]} : vector<8x384xf32> to vector<8x64xf32>
    %39 = vector.extract_strided_slice %34 {offsets = [0, 256], sizes = [8, 64], strides = [1, 1]} : vector<8x384xf32> to vector<8x64xf32>
    %40 = arith.addf %36, %37 : vector<8x64xf32>
    %41 = arith.addf %40, %38 : vector<8x64xf32>
    %42 = arith.addf %41, %39 : vector<8x64xf32>
    %cst_28 = arith.constant 2.500000e-01 : f32
    %43 = vector.broadcast %cst_28 : f32 to vector<8x64xf32>
    %44 = arith.mulf %42, %43 : vector<8x64xf32>
    %45 = tpu.iota {dimensions = array<i32: 1>} : vector<8x64xi32>
    %c51_i32 = arith.constant 51 : i32
    %46 = vector.broadcast %c51_i32 : i32 to vector<8x64xi32>
    %47 = arith.cmpi slt, %45, %46 : vector<8x64xi32>
    %48 = arith.addf %35, %36 : vector<8x64xf32>
    %49 = arith.subf %48, %44 : vector<8x64xf32>
    %cst_29 = arith.constant -1.000000e+30 : f32
    %50 = vector.broadcast %cst_29 : f32 to vector<8x64xf32>
    %51 = arith.select %47, %49, %50 : vector<8x64xi1>, vector<8x64xf32>
    %cst_30 = arith.constant dense<0xFF800000> : vector<8xf32>
    %52 = vector.multi_reduction <maximumf>, %51, %cst_30 [1] : vector<8x64xf32> to vector<8xf32>
    %53 = vector.shape_cast %52 : vector<8xf32> to vector<8x1xf32>
    %54 = vector.broadcast %53 : vector<8x1xf32> to vector<8x64xf32>
    %55 = arith.subf %51, %54 : vector<8x64xf32>
    %56 = math.exp %55 : vector<8x64xf32>
    %cst_31 = arith.constant 0.000000e+00 : f32
    %57 = vector.broadcast %cst_31 : f32 to vector<8x64xf32>
    %58 = arith.select %47, %56, %57 : vector<8x64xi1>, vector<8x64xf32>
    %cst_32 = arith.constant dense<0.000000e+00> : vector<8xf32>
    %59 = vector.multi_reduction <add>, %58, %cst_32 [1] : vector<8x64xf32> to vector<8xf32>
    %60 = vector.shape_cast %59 : vector<8xf32> to vector<8x1xf32>
    %61 = vector.broadcast %60 : vector<8x1xf32> to vector<8x64xf32>
    %62 = arith.divf %58, %61 : vector<8x64xf32>
    %c0_33 = arith.constant 0 : index
    %c0_34 = arith.constant 0 : index
    %c0_35 = arith.constant 0 : index
    %63 = vector.load %arg4[%c0_33, %c0_34, %c0_35] : memref<4x8x64xf32, #tpu.memory_space<vmem>>, vector<1x8x64xf32>
    %64 = vector.shape_cast %63 : vector<1x8x64xf32> to vector<8x64xf32>
    %65 = vector.shape_cast %62 : vector<8x64xf32> to vector<1x8x64xf32>
    tpu.vector_store %arg4[%c0_33, %c0_34, %c0_35], %65 {strides = array<i32>} : memref<4x8x64xf32, #tpu.memory_space<vmem>>, vector<1x8x64xf32>,
    %66 = arith.addf %35, %37 : vector<8x64xf32>
    %67 = arith.subf %66, %44 : vector<8x64xf32>
    %cst_36 = arith.constant -1.000000e+30 : f32
    %68 = vector.broadcast %cst_36 : f32 to vector<8x64xf32>
    %69 = arith.select %47, %67, %68 : vector<8x64xi1>, vector<8x64xf32>
    %cst_37 = arith.constant dense<0xFF800000> : vector<8xf32>
    %70 = vector.multi_reduction <maximumf>, %69, %cst_37 [1] : vector<8x64xf32> to vector<8xf32>
    %71 = vector.shape_cast %70 : vector<8xf32> to vector<8x1xf32>
    %72 = vector.broadcast %71 : vector<8x1xf32> to vector<8x64xf32>
    %73 = arith.subf %69, %72 : vector<8x64xf32>
    %74 = math.exp %73 : vector<8x64xf32>
    %cst_38 = arith.constant 0.000000e+00 : f32
    %75 = vector.broadcast %cst_38 : f32 to vector<8x64xf32>
    %76 = arith.select %47, %74, %75 : vector<8x64xi1>, vector<8x64xf32>
    %cst_39 = arith.constant dense<0.000000e+00> : vector<8xf32>
    %77 = vector.multi_reduction <add>, %76, %cst_39 [1] : vector<8x64xf32> to vector<8xf32>
    %78 = vector.shape_cast %77 : vector<8xf32> to vector<8x1xf32>
    %79 = vector.broadcast %78 : vector<8x1xf32> to vector<8x64xf32>
    %80 = arith.divf %76, %79 : vector<8x64xf32>
    %c1_40 = arith.constant 1 : index
    %c0_41 = arith.constant 0 : index
    %c0_42 = arith.constant 0 : index
    %81 = vector.load %arg4[%c1_40, %c0_41, %c0_42] : memref<4x8x64xf32, #tpu.memory_space<vmem>>, vector<1x8x64xf32>
    %82 = vector.shape_cast %81 : vector<1x8x64xf32> to vector<8x64xf32>
    %83 = vector.shape_cast %80 : vector<8x64xf32> to vector<1x8x64xf32>
    tpu.vector_store %arg4[%c1_40, %c0_41, %c0_42], %83 {strides = array<i32>} : memref<4x8x64xf32, #tpu.memory_space<vmem>>, vector<1x8x64xf32>,
    %84 = arith.addf %35, %38 : vector<8x64xf32>
    %85 = arith.subf %84, %44 : vector<8x64xf32>
    %cst_43 = arith.constant -1.000000e+30 : f32
    %86 = vector.broadcast %cst_43 : f32 to vector<8x64xf32>
    %87 = arith.select %47, %85, %86 : vector<8x64xi1>, vector<8x64xf32>
    %cst_44 = arith.constant dense<0xFF800000> : vector<8xf32>
    %88 = vector.multi_reduction <maximumf>, %87, %cst_44 [1] : vector<8x64xf32> to vector<8xf32>
    %89 = vector.shape_cast %88 : vector<8xf32> to vector<8x1xf32>
    %90 = vector.broadcast %89 : vector<8x1xf32> to vector<8x64xf32>
    %91 = arith.subf %87, %90 : vector<8x64xf32>
    %92 = math.exp %91 : vector<8x64xf32>
    %cst_45 = arith.constant 0.000000e+00 : f32
    %93 = vector.broadcast %cst_45 : f32 to vector<8x64xf32>
    %94 = arith.select %47, %92, %93 : vector<8x64xi1>, vector<8x64xf32>
    %cst_46 = arith.constant dense<0.000000e+00> : vector<8xf32>
    %95 = vector.multi_reduction <add>, %94, %cst_46 [1] : vector<8x64xf32> to vector<8xf32>
    %96 = vector.shape_cast %95 : vector<8xf32> to vector<8x1xf32>
    %97 = vector.broadcast %96 : vector<8x1xf32> to vector<8x64xf32>
    %98 = arith.divf %94, %97 : vector<8x64xf32>
    %c2_47 = arith.constant 2 : index
    %c0_48 = arith.constant 0 : index
    %c0_49 = arith.constant 0 : index
    %99 = vector.load %arg4[%c2_47, %c0_48, %c0_49] : memref<4x8x64xf32, #tpu.memory_space<vmem>>, vector<1x8x64xf32>
    %100 = vector.shape_cast %99 : vector<1x8x64xf32> to vector<8x64xf32>
    %101 = vector.shape_cast %98 : vector<8x64xf32> to vector<1x8x64xf32>
    tpu.vector_store %arg4[%c2_47, %c0_48, %c0_49], %101 {strides = array<i32>} : memref<4x8x64xf32, #tpu.memory_space<vmem>>, vector<1x8x64xf32>,
    %102 = arith.addf %35, %39 : vector<8x64xf32>
    %103 = arith.subf %102, %44 : vector<8x64xf32>
    %cst_50 = arith.constant -1.000000e+30 : f32
    %104 = vector.broadcast %cst_50 : f32 to vector<8x64xf32>
    %105 = arith.select %47, %103, %104 : vector<8x64xi1>, vector<8x64xf32>
    %cst_51 = arith.constant dense<0xFF800000> : vector<8xf32>
    %106 = vector.multi_reduction <maximumf>, %105, %cst_51 [1] : vector<8x64xf32> to vector<8xf32>
    %107 = vector.shape_cast %106 : vector<8xf32> to vector<8x1xf32>
    %108 = vector.broadcast %107 : vector<8x1xf32> to vector<8x64xf32>
    %109 = arith.subf %105, %108 : vector<8x64xf32>
    %110 = math.exp %109 : vector<8x64xf32>
    %cst_52 = arith.constant 0.000000e+00 : f32
    %111 = vector.broadcast %cst_52 : f32 to vector<8x64xf32>
    %112 = arith.select %47, %110, %111 : vector<8x64xi1>, vector<8x64xf32>
    %cst_53 = arith.constant dense<0.000000e+00> : vector<8xf32>
    %113 = vector.multi_reduction <add>, %112, %cst_53 [1] : vector<8x64xf32> to vector<8xf32>
    %114 = vector.shape_cast %113 : vector<8xf32> to vector<8x1xf32>
    %115 = vector.broadcast %114 : vector<8x1xf32> to vector<8x64xf32>
    %116 = arith.divf %112, %115 : vector<8x64xf32>
    %c3_54 = arith.constant 3 : index
    %c0_55 = arith.constant 0 : index
    %c0_56 = arith.constant 0 : index
    %117 = vector.load %arg4[%c3_54, %c0_55, %c0_56] : memref<4x8x64xf32, #tpu.memory_space<vmem>>, vector<1x8x64xf32>
    %118 = vector.shape_cast %117 : vector<1x8x64xf32> to vector<8x64xf32>
    %119 = vector.shape_cast %116 : vector<8x64xf32> to vector<1x8x64xf32>
    tpu.vector_store %arg4[%c3_54, %c0_55, %c0_56], %119 {strides = array<i32>} : memref<4x8x64xf32, #tpu.memory_space<vmem>>, vector<1x8x64xf32>,
    return
  }
  func.func @transform_0(%arg0: i32) -> (i32, i32) {
    %c0_i32 = arith.constant 0 : i32
    %c0_i32_0 = arith.constant 0 : i32
    return %arg0, %c0_i32 : i32, i32
  }
  func.func @transform_1(%arg0: i32) -> (i32, i32, i32) {
    %c0_i32 = arith.constant 0 : i32
    %c0_i32_0 = arith.constant 0 : i32
    %c0_i32_1 = arith.constant 0 : i32
    %c0_i32_2 = arith.constant 0 : i32
    return %c0_i32, %c0_i32_0, %c0_i32_1 : i32, i32, i32
  }
  func.func @transform_2(%arg0: i32) -> (i32, i32, i32) {
    %c0_i32 = arith.constant 0 : i32
    %c0_i32_0 = arith.constant 0 : i32
    %c0_i32_1 = arith.constant 0 : i32
    %c0_i32_2 = arith.constant 0 : i32
    return %c0_i32, %c0_i32_0, %c0_i32_1 : i32, i32, i32
  }
  func.func @transform_3(%arg0: i32) -> (i32, i32, i32) {
    %c0_i32 = arith.constant 0 : i32
    %c0_i32_0 = arith.constant 0 : i32
    %c0_i32_1 = arith.constant 0 : i32
    return %c0_i32, %arg0, %c0_i32_0 : i32, i32, i32
  }
}

</mosaic_0001>

<bundles_post_ra>
// kernel: rainbow_forward.1
= control target key start
LH: loop header
LB: loop body
LE: loop exit
PB: predicated region body
PF: predicated region fallthrough
CT: control target
= control target key end

     0   :  { %8 = vsyncpa [#allocation3], 0  ;;  %s2580_s0 = inlined_call_operand.vmem [shape: f32[8,384], index: 0, kind: input, shape index: {}]   ;;  %s2581_s1 = inlined_call_operand.hbm [shape: f32[4,384,384], index: 1, kind: input, shape index: {}]   ;;  %s2582_s2 = inlined_call_operand.hbm [shape: f32[4,1,384], index: 2, kind: input, shape index: {}]   ;;  %s2583_s3 = inlined_call_operand.vmem [shape: f32[4,8,64], index: 3, kind: output, shape index: {}]  }
   0x1   :  { %9 = vsyncpa [#allocation5], 0  ;;  %s2348_s12 = smov [#allocation2]  }
   0x2   :  { %s17_s13 = sshll.u32 %s2348_s12, 4  ;;  %s18_s13 = int_to_ptr.vmem [resolvable:$true] %s17_s13 }
   0x3   :  { %s2312_s14 = scalar_lea.vmem %s18_s13, 73728  ;;  %p2317_p1 = scmp.lt.s32.totalorder %s18_s13, %s18_s13 }
   0x4   :  { %p2313_p0 = scmp.ne.s32.totalorder %s18_s13, %s2312_s14  ;;  %p2318_p2 = scmp.lt.s32.totalorder %s2312_s14, %s2312_s14 }
   0x6   :  { %p2319_p3 = por %p2318_p2, %p2317_p1 }
   0x8   :  { %p2320_p4 = pnand %p2319_p3, %p2313_p0 }
   0xa   :  { %2323 = shalt.err (!%p2320_p4)
}
   0xb   :  { %s2349_s15 = smov 384   ;;  %s2350_s16 = smov 24  }
   0xc   :  { %23 = dma.hbm_to_vmem [thread:$0]  %s2581_s1, 73728, %s18_s13, [#allocation3], %s2349_s15, %s2349_s15, %s2350_s16  }
   0xd   :  { %s2351_s19 = smov [#allocation4]  }
   0xe   :  { %s29_s20 = sshll.u32 %s2351_s19, 4  ;;  %s30_s20 = int_to_ptr.vmem [resolvable:$true] %s29_s20 }
   0xf   :  { %s2332_s21 = scalar_lea.vmem %s30_s20, 192  ;;  %p2337_p6 = scmp.lt.s32.totalorder %s30_s20, %s30_s20 }
  0x10   :  { %p2333_p5 = scmp.ne.s32.totalorder %s30_s20, %s2332_s21  ;;  %p2338_p7 = scmp.lt.s32.totalorder %s2332_s21, %s2332_s21 }
  0x12   :  { %p2339_p8 = por %p2338_p7, %p2337_p6 }
  0x14   :  { %p2340_p9 = pnand %p2339_p8, %p2333_p5 }
  0x16   :  { %2343 = shalt.err (!%p2340_p9)
}
  0x17   :  { %s2352_s22 = smov 48   ;;  %s2353_s23 = smov 3  }
  0x18   :  { %35 = dma.hbm_to_vmem [thread:$0]  %s2582_s2, 192, %s30_s20, [#allocation5], %s2352_s22, %s2352_s22, %s2353_s23  }
  0x19   :  { %2344 = dma.done.wait [#allocation3], 73728  }
  0x1a   :  { %2345 = vsyncadd [#allocation3], 4294893568 }
  0x1b   :  { %2346 = dma.done.wait [#allocation5], 192  }
  0x1c   :  { %2347 = vsyncadd [#allocation5], 4294967104  ;;  %v2354_v0 = vmov 0.0   ;;  %v91_v1 = vld [vmem:[#allocation2 + $0x170] sm:$0xff]  ;;  %v90_v2 = vld [vmem:[#allocation2 + $0x168] sm:$0xff]  ;;  %vm2355_vm0 = vmmov 0  }
  0x1d   :  { %341 = vmatprep.mubr.f32.mxu1 %v2354_v0  ;;  %v88_v3 = vld [vmem:[#allocation2 + $0x158] sm:$0xff]  ;;  %206 = vmatprep.subr.mxu0 %v91_v1  ;;  %v87_v4 = vld [vmem:[#allocation2 + $0x150] sm:$0xff]  ;;  %v85_v5 = vld [vmem:[#allocation2 + $0x140] sm:$0xff]  ;;  %vm1858_vm2 = vcmask 523264  }
  0x1e   :  { %207 = vmatpush1.msra.mxu0 %v90_v2  ;;  %v84_v6 = vld [vmem:[#allocation2 + $0x138] sm:$0xff]  ;;  %v82_v7 = vld [vmem:[#allocation2 + $0x128] sm:$0xff]  ;;  %v81_v8 = vld [vmem:[#allocation2 + $0x120] sm:$0xff] }
  0x1f   :  { %208 = vmatprep.subr.mxu0 %v88_v3  ;;  %v79_v9 = vld [vmem:[#allocation2 + $0x110] sm:$0xff]  ;;  %v78_v10 = vld [vmem:[#allocation2 + $0x108] sm:$0xff]  ;;  %v76_v11 = vld [vmem:[#allocation2 + $0xf8] sm:$0xff] }
  0x20   :  { %209 = vmatpush1.msra.mxu0 %v87_v4  ;;  %v187_v12 = vld [vmem:[#allocation2 + $0x470] sm:$0xff]  ;;  %v186_v14 = vld [vmem:[#allocation2 + $0x468] sm:$0xff]  ;;  %v184_v15 = vld [vmem:[#allocation2 + $0x458] sm:$0xff] }
  0x21   :  { %210 = vmatprep.subr.mxu0 %v85_v5  ;;  %v75_v13 = vld [vmem:[#allocation2 + $0xf0] sm:$0xff]  ;;  %277 = vmatprep.subr.mxu1 %v187_v12  ;;  %v73_v16 = vld [vmem:[#allocation2 + $0xe0] sm:$0xff]  ;;  %v72_v18 = vld [vmem:[#allocation2 + $0xd8] sm:$0xff] }
  0x22   :  { %211 = vmatpush1.msra.mxu0 %v84_v6  ;;  %278 = vmatpush1.msra.mxu1 %v186_v14  ;;  %v183_v17 = vld [vmem:[#allocation2 + $0x450] sm:$0xff]  ;;  %v181_v19 = vld [vmem:[#allocation2 + $0x440] sm:$0xff]  ;;  %v180_v20 = vld [vmem:[#allocation2 + $0x438] sm:$0xff] }
  0x23   :  { %212 = vmatprep.subr.mxu0 %v82_v7  ;;  %279 = vmatprep.subr.mxu1 %v184_v15  ;;  %v70_v21 = vld [vmem:[#allocation2 + $0xc8] sm:$0xff]  ;;  %v69_v23 = vld [vmem:[#allocation2 + $0xc0] sm:$0xff]  ;;  %v67_v25 = vld [vmem:[#allocation2 + $0xb0] sm:$0xff] }
  0x24   :  { %213 = vmatpush1.msra.mxu0 %v81_v8  ;;  %280 = vmatpush1.msra.mxu1 %v183_v17  ;;  %v178_v22 = vld [vmem:[#allocation2 + $0x428] sm:$0xff]  ;;  %v177_v24 = vld [vmem:[#allocation2 + $0x420] sm:$0xff]  ;;  %v175_v26 = vld [vmem:[#allocation2 + $0x410] sm:$0xff] }
  0x25   :  { %214 = vmatprep.subr.mxu0 %v79_v9  ;;  %281 = vmatprep.subr.mxu1 %v181_v19  ;;  %v66_v27 = vld [vmem:[#allocation2 + $0xa8] sm:$0xff]  ;;  %v64_v29 = vld [vmem:[#allocation2 + $0x98] sm:$0xff]  ;;  %v63_v31 = vld [vmem:[#allocation2 + $0x90] sm:$0xff] }
  0x26   :  { %215 = vmatpush1.msra.mxu0 %v78_v10  ;;  %282 = vmatpush1.msra.mxu1 %v180_v20  ;;  %v174_v28 = vld [vmem:[#allocation2 + $0x408] sm:$0xff]  ;;  %v172_v30 = vld [vmem:[#allocation2 + $0x3f8] sm:$0xff]  ;;  %v171_v32 = vld [vmem:[#allocation2 + $0x3f0] sm:$0xff] }
  0x27   :  { %216 = vmatprep.subr.mxu0 %v76_v11  ;;  %283 = vmatprep.subr.mxu1 %v178_v22  ;;  %v61_v33 = vld [vmem:[#allocation2 + $0x80] sm:$0xff]  ;;  %v60_v35 = vld [vmem:[#allocation2 + $0x78] sm:$0xff]  ;;  %v58_v37 = vld [vmem:[#allocation2 + $0x68] sm:$0xff] }
  0x28   :  { %217 = vmatpush1.msra.mxu0 %v75_v13  ;;  %284 = vmatpush1.msra.mxu1 %v177_v24  ;;  %v169_v34 = vld [vmem:[#allocation2 + $0x3e0] sm:$0xff]  ;;  %v168_v36 = vld [vmem:[#allocation2 + $0x3d8] sm:$0xff]  ;;  %v166_v38 = vld [vmem:[#allocation2 + $0x3c8] sm:$0xff] }
  0x29   :  { %218 = vmatprep.subr.mxu0 %v73_v16  ;;  %285 = vmatprep.subr.mxu1 %v175_v26  ;;  %v57_v39 = vld [vmem:[#allocation2 + $0x60] sm:$0xff]  ;;  %v55_v41 = vld [vmem:[#allocation2 + $0x50] sm:$0xff]  ;;  %v54_v43 = vld [vmem:[#allocation2 + $0x48] sm:$0xff] }
  0x2a   :  { %219 = vmatpush1.msra.mxu0 %v72_v18  ;;  %286 = vmatpush1.msra.mxu1 %v174_v28  ;;  %v165_v40 = vld [vmem:[#allocation2 + $0x3c0] sm:$0xff]  ;;  %v163_v42 = vld [vmem:[#allocation2 + $0x3b0] sm:$0xff]  ;;  %v162_v44 = vld [vmem:[#allocation2 + $0x3a8] sm:$0xff] }
  0x2b   :  { %220 = vmatprep.subr.mxu0 %v70_v21  ;;  %287 = vmatprep.subr.mxu1 %v172_v30  ;;  %v52_v45 = vld [vmem:[#allocation2 + $0x38] sm:$0xff]  ;;  %v51_v47 = vld [vmem:[#allocation2 + $0x30] sm:$0xff]  ;;  %v49_v49 = vld [vmem:[#allocation2 + $0x20] sm:$0xff] }
  0x2c   :  { %221 = vmatpush1.msra.mxu0 %v69_v23  ;;  %288 = vmatpush1.msra.mxu1 %v171_v32  ;;  %v160_v46 = vld [vmem:[#allocation2 + $0x398] sm:$0xff]  ;;  %v159_v48 = vld [vmem:[#allocation2 + $0x390] sm:$0xff]  ;;  %v157_v50 = vld [vmem:[#allocation2 + $0x380] sm:$0xff] }
  0x2d   :  { %222 = vmatprep.subr.mxu0 %v67_v25  ;;  %289 = vmatprep.subr.mxu1 %v169_v34  ;;  %v48_v51 = vld [vmem:[#allocation2 + $0x18] sm:$0xff]  ;;  %v46_v53 = vld [vmem:[#allocation2 + $0x8] sm:$0xff]  ;;  %v45_v55 = vld [vmem:[#allocation2] sm:$0xff] }
  0x2e   :  { %223 = vmatpush1.msra.mxu0 %v66_v27  ;;  %290 = vmatpush1.msra.mxu1 %v168_v36  ;;  %v156_v52 = vld [vmem:[#allocation2 + $0x378] sm:$0xff]  ;;  %v154_v54 = vld [vmem:[#allocation2 + $0x368] sm:$0xff]  ;;  %v153_v56 = vld [vmem:[#allocation2 + $0x360] sm:$0xff] }
  0x2f   :  { %224 = vmatprep.subr.mxu0 %v64_v29  ;;  %291 = vmatprep.subr.mxu1 %v166_v38  ;;  %v139_v57 = vld [vmem:[#allocation2 + $0x2f0] sm:$0xff]  ;;  %v138_v59 = vld [vmem:[#allocation2 + $0x2e8] sm:$0xff]  ;;  %v136_v61 = vld [vmem:[#allocation2 + $0x2d8] sm:$0xff] }
  0x30   :  { %225 = vmatpush1.msra.mxu0 %v63_v31  ;;  %292 = vmatpush1.msra.mxu1 %v165_v40  ;;  %v151_v58 = vld [vmem:[#allocation2 + $0x350] sm:$0xff]  ;;  %v150_v60 = vld [vmem:[#allocation2 + $0x348] sm:$0xff]  ;;  %v148_v62 = vld [vmem:[#allocation2 + $0x338] sm:$0xff] }
  0x31   :  { %226 = vmatprep.subr.mxu0 %v61_v33  ;;  %293 = vmatprep.subr.mxu1 %v163_v42  ;;  %v135_v63 = vld [vmem:[#allocation2 + $0x2d0] sm:$0xff]  ;;  %v133_v2 = vld [vmem:[#allocation2 + $0x2c0] sm:$0xff]  ;;  %v132_v4 = vld [vmem:[#allocation2 + $0x2b8] sm:$0xff] }
  0x32   :  { %227 = vmatpush1.msra.mxu0 %v60_v35  ;;  %294 = vmatpush1.msra.mxu1 %v162_v44  ;;  %v147_v1 = vld [vmem:[#allocation2 + $0x330] sm:$0xff]  ;;  %v145_v3 = vld [vmem:[#allocation2 + $0x320] sm:$0xff]  ;;  %v144_v5 = vld [vmem:[#allocation2 + $0x318] sm:$0xff] }
  0x33   :  { %228 = vmatprep.subr.mxu0 %v58_v37  ;;  %295 = vmatprep.subr.mxu1 %v160_v46  ;;  %v130_v6 = vld [vmem:[#allocation2 + $0x2a8] sm:$0xff]  ;;  %v129_v8 = vld [vmem:[#allocation2 + $0x2a0] sm:$0xff]  ;;  %v127_v10 = vld [vmem:[#allocation2 + $0x290] sm:$0xff] }
  0x34   :  { %229 = vmatpush1.msra.mxu0 %v57_v39  ;;  %296 = vmatpush1.msra.mxu1 %v159_v48  ;;  %v142_v7 = vld [vmem:[#allocation2 + $0x308] sm:$0xff]  ;;  %v141_v9 = vld [vmem:[#allocation2 + $0x300] sm:$0xff]  ;;  %v140_v11 = vld [vmem:[#allocation2 + $0x2f8] sm:$0xff] }
  0x35   :  { %230 = vmatprep.subr.mxu0 %v55_v41  ;;  %297 = vmatprep.subr.mxu1 %v157_v50  ;;  %v126_v12 = vld [vmem:[#allocation2 + $0x288] sm:$0xff]  ;;  %v2387_v13 = vld [vmem:[%s2580_s0 + $0x10] sm:$0xff]  ;;  %v124_v14 = vld [vmem:[#allocation2 + $0x278] sm:$0xff] }
  0x36   :  { %231 = vmatpush1.msra.mxu0 %v54_v43  ;;  %298 = vmatpush1.msra.mxu1 %v156_v52  ;;  %v92_v15 = vld [vmem:[#allocation2 + $0x178] sm:$0xff]  ;;  %v123_v16 = vld [vmem:[#allocation2 + $0x270] sm:$0xff]  ;;  %v137_v17 = vld [vmem:[#allocation2 + $0x2e0] sm:$0xff] }
  0x37   :  { %232 = vmatprep.subr.mxu0 %v52_v45  ;;  %299 = vmatprep.subr.mxu1 %v154_v54  ;;  %v121_v18 = vld [vmem:[#allocation2 + $0x260] sm:$0xff]  ;;  %v120_v20 = vld [vmem:[#allocation2 + $0x258] sm:$0xff]  ;;  %v134_v21 = vld [vmem:[#allocation2 + $0x2c8] sm:$0xff] }
  0x38   :  { %233 = vmatpush1.msra.mxu0 %v51_v47  ;;  %300 = vmatpush1.msra.mxu1 %v153_v56  ;;  %v89_v19 = vld [vmem:[#allocation2 + $0x160] sm:$0xff]  ;;  %v118_v22 = vld [vmem:[#allocation2 + $0x248] sm:$0xff]  ;;  %v131_v25 = vld [vmem:[#allocation2 + $0x2b0] sm:$0xff] }
  0x39   :  { %234 = vmatprep.subr.mxu0 %v49_v49  ;;  %301 = vmatprep.subr.mxu1 %v151_v58  ;;  %v86_v23 = vld [vmem:[#allocation2 + $0x148] sm:$0xff]  ;;  %v117_v24 = vld [vmem:[#allocation2 + $0x240] sm:$0xff]  ;;  %v115_v26 = vld [vmem:[#allocation2 + $0x230] sm:$0xff] }
  0x3a   :  { %235 = vmatpush1.msra.mxu0 %v48_v51  ;;  %302 = vmatpush1.msra.mxu1 %v150_v60  ;;  %v2393_v27 = vld [vmem:[%s2580_s0 + $0x8] sm:$0xff]  ;;  %v83_v29 = vld [vmem:[#allocation2 + $0x130] sm:$0xff]  ;;  %v112_v30 = vld [vmem:[#allocation2 + $0x218] sm:$0xff] }
  0x3b   :  { %236 = vmatprep.subr.mxu0 %v46_v53  ;;  %303 = vmatprep.subr.mxu1 %v148_v62  ;;  %v114_v28 = vld [vmem:[#allocation2 + $0x228] sm:$0xff]  ;;  %v128_v31 = vld [vmem:[#allocation2 + $0x298] sm:$0xff]  ;;  %v111_v32 = vld [vmem:[#allocation2 + $0x210] sm:$0xff] }
  0x3c   :  { %237 = vmatpush1.msra.mxu0 %v45_v55  ;;  %304 = vmatpush1.msra.mxu1 %v147_v1  ;;  %v80_v33 = vld [vmem:[#allocation2 + $0x118] sm:$0xff]  ;;  %v109_v34 = vld [vmem:[#allocation2 + $0x200] sm:$0xff]  ;;  %v106_v38 = vld [vmem:[#allocation2 + $0x1e8] sm:$0xff] }
  0x3d   :  { %238 = vmatprep.subr.mxu0 %v139_v57  ;;  %305 = vmatprep.subr.mxu1 %v145_v3  ;;  %v125_v35 = vld [vmem:[#allocation2 + $0x280] sm:$0xff]  ;;  %v108_v36 = vld [vmem:[#allocation2 + $0x1f8] sm:$0xff]  ;;  %v122_v39 = vld [vmem:[#allocation2 + $0x268] sm:$0xff] }
  0x3e   :  { %239 = vmatpush2.msra.mxu0 %v138_v59  ;;  %306 = vmatpush1.msra.mxu1 %v144_v5  ;;  %v77_v37 = vld [vmem:[#allocation2 + $0x100] sm:$0xff]  ;;  %v74_v41 = vld [vmem:[#allocation2 + $0xe8] sm:$0xff]  ;;  %v103_v42 = vld [vmem:[#allocation2 + $0x1d0] sm:$0xff] }
  0x3f   :  { %240 = vmatprep.subr.mxu0 %v136_v61  ;;  %307 = vmatprep.subr.mxu1 %v142_v7  ;;  %v105_v40 = vld [vmem:[#allocation2 + $0x1e0] sm:$0xff]  ;;  %v119_v43 = vld [vmem:[#allocation2 + $0x250] sm:$0xff]  ;;  %v102_v44 = vld [vmem:[#allocation2 + $0x1c8] sm:$0xff] }
  0x40   :  { %241 = vmatpush2.msra.mxu0 %v135_v63  ;;  %308 = vmatpush1.msra.mxu1 %v141_v9  ;;  %v71_v45 = vld [vmem:[#allocation2 + $0xd0] sm:$0xff]  ;;  %v100_v46 = vld [vmem:[#allocation2 + $0x1b8] sm:$0xff]  ;;  %v97_v50 = vld [vmem:[#allocation2 + $0x1a0] sm:$0xff] }
  0x41   :  { %242 = vmatprep.subr.mxu0 %v133_v2  ;;  %1931 = vmatprep.subr.mxu1 %v140_v11  ;;  %v116_v47 = vld [vmem:[#allocation2 + $0x238] sm:$0xff]  ;;  %v99_v48 = vld [vmem:[#allocation2 + $0x1b0] sm:$0xff]  ;;  %v113_v51 = vld [vmem:[#allocation2 + $0x220] sm:$0xff] }
  0x42   :  { %243 = vmatpush2.msra.mxu0 %v132_v4  ;;  %342 = vmatmul.mubr.f32.vlgmr.msra.gmra.mxu1 %v2387_v13  ;;  %v68_v49 = vld [vmem:[#allocation2 + $0xb8] sm:$0xff]  ;;  %v65_v53 = vld [vmem:[#allocation2 + $0xa0] sm:$0xff]  ;;  %v94_v54 = vld [vmem:[#allocation2 + $0x188] sm:$0xff] }
  0x43   :  { %244 = vmatprep.subr.mxu0 %v130_v6  ;;  %1932 = vmatpush3.msra.mxu1 %v92_v15  ;;  %v96_v52 = vld [vmem:[#allocation2 + $0x198] sm:$0xff]  ;;  %v110_v55 = vld [vmem:[#allocation2 + $0x208] sm:$0xff]  ;;  %v93_v56 = vld [vmem:[#allocation2 + $0x180] sm:$0xff] }
  0x44   :  { %245 = vmatpush2.msra.mxu0 %v129_v8  ;;  %1933 = vmatprep.subr.mxu1 %v137_v17  ;;  %v62_v57 = vld [vmem:[#allocation2 + $0x88] sm:$0xff]  ;;  %v42_v58 = vld [vmem:[%s2580_s0] sm:$0xff]  ;;  %v188_v59 = vld [vmem:[#allocation2 + $0x478] sm:$0xff]  ;;  %s2356_s0 = smov 64  }
  0x45   :  { %246 = vmatprep.subr.mxu0 %v127_v10  ;;  %1934 = vmatpush3.msra.mxu1 %v89_v19  ;;  %v107_v60 = vld [vmem:[#allocation2 + $0x1f0] sm:$0xff]  ;;  %v185_v62 = vld [vmem:[#allocation2 + $0x460] sm:$0xff]  ;;  %v104_v63 = vld [vmem:[#allocation2 + $0x1d8] sm:$0xff] }
  0x46   :  { %247 = vmatpush2.msra.mxu0 %v126_v12  ;;  %1935 = vmatprep.subr.mxu1 %v134_v21  ;;  %v59_v61 = vld [vmem:[#allocation2 + $0x70] sm:$0xff]  ;;  %v56_v1 = vld [vmem:[#allocation2 + $0x58] sm:$0xff]  ;;  %v182_v2 = vld [vmem:[#allocation2 + $0x448] sm:$0xff] }
  0x47   :  { %248 = vmatprep.subr.mxu0 %v124_v14  ;;  %1936 = vmatpush3.msra.mxu1 %v86_v23  ;;  %v101_v3 = vld [vmem:[#allocation2 + $0x1c0] sm:$0xff]  ;;  %v179_v5 = vld [vmem:[#allocation2 + $0x430] sm:$0xff]  ;;  %v98_v6 = vld [vmem:[#allocation2 + $0x1a8] sm:$0xff] }
  0x48   :  { %249 = vmatpush2.msra.mxu0 %v123_v16  ;;  %1937 = vmatprep.subr.mxu1 %v131_v25  ;;  %v53_v4 = vld [vmem:[#allocation2 + $0x40] sm:$0xff]  ;;  %v50_v7 = vld [vmem:[#allocation2 + $0x28] sm:$0xff]  ;;  %v176_v8 = vld [vmem:[#allocation2 + $0x418] sm:$0xff] }
  0x49   :  { %250 = vmatprep.subr.mxu0 %v121_v18  ;;  %270 = vmatprep.mubr.f32.mxu0 %v2393_v27  ;;  %v95_v9 = vld [vmem:[#allocation2 + $0x190] sm:$0xff]  ;;  %v173_v11 = vld [vmem:[#allocation2 + $0x400] sm:$0xff]  ;;  %v170_v12 = vld [vmem:[#allocation2 + $0x3e8] sm:$0xff] }
  0x4a   :  { %251 = vmatpush2.msra.mxu0 %v120_v20  ;;  %1938 = vmatpush3.msra.mxu1 %v83_v29  ;;  %v47_v10 = vld [vmem:[#allocation2 + $0x10] sm:$0xff]  ;;  %v537_v16 = vld [vmem:[#allocation2 + $0x5e8] sm:$0xff]  ;;  %v535_v17 = vld [vmem:[#allocation2 + $0x5d8] sm:$0xff] }
  0x4b   :  { %252 = vmatprep.subr.mxu0 %v118_v22  ;;  %1939 = vmatprep.subr.mxu1 %v128_v31  ;;  %v538_v14 = vld [vmem:[#allocation2 + $0x5f0] sm:$0xff]  ;;  %v164_v18 = vld [vmem:[#allocation2 + $0x3b8] sm:$0xff]  ;;  %v532_v20 = vld [vmem:[#allocation2 + $0x5c0] sm:$0xff] }
  0x4c   :  { %253 = vmatpush2.msra.mxu0 %v117_v24  ;;  %1940 = vmatpush3.msra.mxu1 %v80_v33  ;;  %v167_v15 = vld [vmem:[#allocation2 + $0x3d0] sm:$0xff]  ;;  %v161_v21 = vld [vmem:[#allocation2 + $0x3a0] sm:$0xff]  ;;  %v531_v22 = vld [vmem:[#allocation2 + $0x5b8] sm:$0xff] }
  0x4d   :  { %254 = vmatprep.subr.mxu0 %v115_v26  ;;  %1941 = vmatprep.subr.mxu1 %v125_v35  ;;  %v534_v19 = vld [vmem:[#allocation2 + $0x5d0] sm:$0xff]  ;;  %v529_v23 = vld [vmem:[#allocation2 + $0x5a8] sm:$0xff]  ;;  %v528_v25 = vld [vmem:[#allocation2 + $0x5a0] sm:$0xff] }
  0x4e   :  { %255 = vmatpush2.msra.mxu0 %v114_v28  ;;  %1942 = vmatpush3.msra.mxu1 %v77_v37  ;;  %v158_v24 = vld [vmem:[#allocation2 + $0x388] sm:$0xff]  ;;  %v526_v26 = vld [vmem:[#allocation2 + $0x590] sm:$0xff]  ;;  %v523_v29 = vld [vmem:[#allocation2 + $0x578] sm:$0xff] }
  0x4f   :  { %256 = vmatprep.subr.mxu0 %v112_v30  ;;  %1943 = vmatprep.subr.mxu1 %v122_v39  ;;  %v525_v28 = vld [vmem:[#allocation2 + $0x588] sm:$0xff]  ;;  %v152_v30 = vld [vmem:[#allocation2 + $0x358] sm:$0xff]  ;;  %v522_v31 = vld [vmem:[#allocation2 + $0x570] sm:$0xff] }
  0x50   :  { %257 = vmatpush2.msra.mxu0 %v111_v32  ;;  %1944 = vmatpush3.msra.mxu1 %v74_v41  ;;  %v520_v32 = vld [vmem:[#allocation2 + $0x560] sm:$0xff]  ;;  %v517_v35 = vld [vmem:[#allocation2 + $0x548] sm:$0xff]  ;;  %v143_v39 = vld [vmem:[#allocation2 + $0x310] sm:$0xff] }
  0x51   :  { %258 = vmatprep.subr.mxu0 %v109_v34  ;;  %1945 = vmatprep.subr.mxu1 %v119_v43  ;;  %v149_v33 = vld [vmem:[#allocation2 + $0x340] sm:$0xff]  ;;  %v519_v34 = vld [vmem:[#allocation2 + $0x558] sm:$0xff] }
  0x52   :  { %259 = vmatpush2.msra.mxu0 %v108_v36  ;;  %1946 = vmatpush3.msra.mxu1 %v71_v45  ;;  %v146_v36 = vld [vmem:[#allocation2 + $0x328] sm:$0xff]  ;;  %v516_v37 = vld [vmem:[#allocation2 + $0x540] sm:$0xff]  ;;  %v511_v41 = vld [vmem:[#allocation2 + $0x518] sm:$0xff] }
  0x53   :  { %260 = vmatprep.subr.mxu0 %v106_v38  ;;  %1947 = vmatprep.subr.mxu1 %v116_v47  ;;  %v514_v38 = vld [vmem:[#allocation2 + $0x530] sm:$0xff]  ;;  %v508_v43 = vld [vmem:[#allocation2 + $0x500] sm:$0xff]  ;;  %v505_v45 = vld [vmem:[#allocation2 + $0x4e8] sm:$0xff] }
  0x54   :  { %261 = vmatpush2.msra.mxu0 %v105_v40  ;;  %1948 = vmatpush3.msra.mxu1 %v68_v49  ;;  %v513_v40 = vld [vmem:[#allocation2 + $0x528] sm:$0xff]  ;;  %v502_v47 = vld [vmem:[#allocation2 + $0x4d0] sm:$0xff]  ;;  %v499_v49 = vld [vmem:[#allocation2 + $0x4b8] sm:$0xff] }
  0x55   :  { %262 = vmatprep.subr.mxu0 %v103_v42  ;;  %1949 = vmatprep.subr.mxu1 %v113_v51  ;;  %v510_v42 = vld [vmem:[#allocation2 + $0x510] sm:$0xff]  ;;  %v496_v51 = vld [vmem:[#allocation2 + $0x4a0] sm:$0xff] }
  0x56   :  { %263 = vmatpush2.msra.mxu0 %v102_v44  ;;  %1950 = vmatpush3.msra.mxu1 %v65_v53  ;;  %v507_v44 = vld [vmem:[#allocation2 + $0x4f8] sm:$0xff]  ;;  %v492_v53 = vld [vmem:[#allocation2 + $0x480] sm:$0xff] }
  0x57   :  { %264 = vmatprep.subr.mxu0 %v100_v46  ;;  %1951 = vmatprep.subr.mxu1 %v110_v55  ;;  %v504_v46 = vld [vmem:[#allocation2 + $0x4e0] sm:$0xff]  ;;  %v585_v55 = vld [vmem:[#allocation2 + $0x768] sm:$0xff] }
  0x58   :  { %265 = vmatpush2.msra.mxu0 %v99_v48  ;;  %1952 = vmatpush3.msra.mxu1 %v62_v57  ;;  %v501_v48 = vld [vmem:[#allocation2 + $0x4c8] sm:$0xff]  ;;  %v582_v57 = vld [vmem:[#allocation2 + $0x750] sm:$0xff] }
  0x59   :  { %266 = vmatprep.subr.mxu0 %v97_v50  ;;  %1953 = vmatprep.subr.mxu1 %v107_v60  ;;  %v498_v50 = vld [vmem:[#allocation2 + $0x4b0] sm:$0xff]  ;;  %v577_v60 = vld [vmem:[#allocation2 + $0x728] sm:$0xff] }
  0x5a   :  { %267 = vmatpush2.msra.mxu0 %v96_v52  ;;  %1954 = vmatpush3.msra.mxu1 %v59_v61  ;;  %v493_v52 = vld [vmem:[#allocation2 + $0x488] sm:$0xff]  ;;  %v576_v61 = vld [vmem:[#allocation2 + $0x720] sm:$0xff] }
  0x5b   :  { %268 = vmatprep.subr.mxu0 %v94_v54  ;;  %1955 = vmatprep.subr.mxu1 %v104_v63  ;;  %v586_v54 = vld [vmem:[#allocation2 + $0x770] sm:$0xff]  ;;  %v573_v63 = vld [vmem:[#allocation2 + $0x708] sm:$0xff] }
  0x5c   :  { %269 = vmatpush2.msra.mxu0 %v93_v56  ;;  %1956 = vmatpush3.msra.mxu1 %v56_v1  ;;  %v583_v56 = vld [vmem:[#allocation2 + $0x758] sm:$0xff] }
  0x5d   :  { %271 = vmatmul.mubr.f32.vlgmr.msra.gmra.mxu0 %v42_v58  ;;  %2139 = vmatprep.subr.mxu0 %v2354_v0  ;;  %v571_v1 = vld [vmem:[#allocation2 + $0x6f8] sm:$0xff] }
  0x5e   :  { %2140 = vmatpush3.msra.mxu0 %v188_v59  ;;  %1957 = vmatprep.subr.mxu1 %v101_v3  ;;  %v579_v59 = vld [vmem:[#allocation2 + $0x738] sm:$0xff]  ;;  %v568_v3 = vld [vmem:[#allocation2 + $0x6e0] sm:$0xff] }
  0x5f   :  { %2141 = vmatprep.subr.mxu0 %v2354_v0  ;;  %1958 = vmatpush3.msra.mxu1 %v53_v4  ;;  %v567_v4 = vld [vmem:[#allocation2 + $0x6d8] sm:$0xff] }
  0x60   :  { %2142 = vmatpush3.msra.mxu0 %v185_v62  ;;  %1959 = vmatprep.subr.mxu1 %v98_v6  ;;  %v574_v62 = vld [vmem:[#allocation2 + $0x710] sm:$0xff]  ;;  %v564_v6 = vld [vmem:[#allocation2 + $0x6c0] sm:$0xff] }
  0x61   :  { %2143 = vmatprep.subr.mxu0 %v2354_v0  ;;  %1960 = vmatpush3.msra.mxu1 %v50_v7  ;;  %v562_v7 = vld [vmem:[#allocation2 + $0x6b0] sm:$0xff] }
  0x62   :  { %2144 = vmatpush3.msra.mxu0 %v182_v2  ;;  %1961 = vmatprep.subr.mxu1 %v95_v9  ;;  %v570_v2 = vld [vmem:[#allocation2 + $0x6f0] sm:$0xff]  ;;  %v559_v9 = vld [vmem:[#allocation2 + $0x698] sm:$0xff] }
  0x63   :  { %2145 = vmatprep.subr.mxu0 %v2354_v0  ;;  %1962 = vmatpush3.msra.mxu1 %v47_v10  ;;  %v558_v10 = vld [vmem:[#allocation2 + $0x690] sm:$0xff] }
  0x64   :  { %2146 = vmatpush3.msra.mxu0 %v179_v5  ;;  %412 = vmatprep.mubr.f32.mxu1 %v2393_v27  ;;  %v155_v27 = vld [vmem:[#allocation2 + $0x370] sm:$0xff]  ;;  %v565_v5 = vld [vmem:[#allocation2 + $0x6c8] sm:$0xff] }
  0x65   :  { %2147 = vmatprep.subr.mxu0 %v2354_v0  ;;  %413 = vmatmul.mubr.f32.vlgmr.msra.gmra.mxu1 %v42_v58  ;;  %v580_v58 = vld [vmem:[#allocation2 + $0x740] sm:$0xff] }
  0x66   :  { %2148 = vmatpush3.msra.mxu0 %v176_v8  ;;  %2171 = vmatprep.mubr.msk.f32.mxu0 %vm2355_vm0, %v2354_v0  ;;  %v561_v8 = vld [vmem:[#allocation2 + $0x6a8] sm:$0xff] }
  0x67   :  { %2149 = vmatprep.subr.mxu0 %v2354_v0  ;;  %654 = vmatprep.subr.mxu1 %v538_v14  ;;  %v553_v14 = vld [vmem:[#allocation2 + $0x668] sm:$0xff] }
  0x68   :  { %2150 = vmatpush3.msra.mxu0 %v173_v11  ;;  %655 = vmatpush1.msra.mxu1 %v537_v16  ;;  %v556_v11 = vld [vmem:[#allocation2 + $0x680] sm:$0xff]  ;;  %v550_v16 = vld [vmem:[#allocation2 + $0x650] sm:$0xff] }
  0x69   :  { %2151 = vmatprep.subr.mxu0 %v2354_v0  ;;  %656 = vmatprep.subr.mxu1 %v535_v17  ;;  %v634_v17 = vld [vmem:[#allocation2 + $0x8f0] sm:$0xff] }
  0x6a   :  { %2152 = vmatpush3.msra.mxu0 %v170_v12  ;;  %657 = vmatpush1.msra.mxu1 %v534_v19  ;;  %v555_v12 = vld [vmem:[#allocation2 + $0x678] sm:$0xff]  ;;  %v633_v19 = vld [vmem:[#allocation2 + $0x8e8] sm:$0xff] }
  0x6b   :  { %2153 = vmatprep.subr.mxu0 %v2354_v0  ;;  %658 = vmatprep.subr.mxu1 %v532_v20  ;;  %v547_v20 = vld [vmem:[#allocation2 + $0x638] sm:$0xff] }
  0x6c   :  { %2154 = vmatpush3.msra.mxu0 %v167_v15  ;;  %659 = vmatpush1.msra.mxu1 %v531_v22  ;;  %v552_v15 = vld [vmem:[#allocation2 + $0x660] sm:$0xff]  ;;  %v546_v22 = vld [vmem:[#allocation2 + $0x630] sm:$0xff] }
  0x6d   :  { %2155 = vmatprep.subr.mxu0 %v2354_v0  ;;  %660 = vmatprep.subr.mxu1 %v529_v23  ;;  %v630_v23 = vld [vmem:[#allocation2 + $0x8d0] sm:$0xff] }
  0x6e   :  { %2156 = vmatpush3.msra.mxu0 %v164_v18  ;;  %661 = vmatpush1.msra.mxu1 %v528_v25  ;;  %v549_v18 = vld [vmem:[#allocation2 + $0x648] sm:$0xff]  ;;  %v628_v25 = vld [vmem:[#allocation2 + $0x8c0] sm:$0xff] }
  0x6f   :  { %2157 = vmatprep.subr.mxu0 %v2354_v0  ;;  %662 = vmatprep.subr.mxu1 %v526_v26  ;;  %v543_v26 = vld [vmem:[#allocation2 + $0x618] sm:$0xff] }
  0x70   :  { %2158 = vmatpush3.msra.mxu0 %v161_v21  ;;  %663 = vmatpush1.msra.mxu1 %v525_v28  ;;  %v631_v21 = vld [vmem:[#allocation2 + $0x8d8] sm:$0xff]  ;;  %v541_v28 = vld [vmem:[#allocation2 + $0x608] sm:$0xff] }
  0x71   :  { %2159 = vmatprep.subr.mxu0 %v2354_v0  ;;  %664 = vmatprep.subr.mxu1 %v523_v29  ;;  %v625_v29 = vld [vmem:[#allocation2 + $0x8a8] sm:$0xff] }
  0x72   :  { %2160 = vmatpush3.msra.mxu0 %v158_v24  ;;  %665 = vmatpush1.msra.mxu1 %v522_v31  ;;  %v544_v24 = vld [vmem:[#allocation2 + $0x620] sm:$0xff] }
  0x73   :  { %2161 = vmatprep.subr.mxu0 %v2354_v0  ;;  %666 = vmatprep.subr.mxu1 %v520_v32  ;;  %v624_v31 = vld [vmem:[#allocation2 + $0x8a0] sm:$0xff]  ;;  %v622_v32 = vld [vmem:[#allocation2 + $0x890] sm:$0xff] }
  0x74   :  { %2162 = vmatpush3.msra.mxu0 %v155_v27  ;;  %667 = vmatpush1.msra.mxu1 %v519_v34  ;;  %v627_v27 = vld [vmem:[#allocation2 + $0x8b8] sm:$0xff] }
  0x75   :  { %2163 = vmatprep.subr.mxu0 %v2354_v0  ;;  %668 = vmatprep.subr.mxu1 %v517_v35  ;;  %v619_v34 = vld [vmem:[#allocation2 + $0x878] sm:$0xff]  ;;  %v618_v35 = vld [vmem:[#allocation2 + $0x870] sm:$0xff] }
  0x76   :  { %2164 = vmatpush3.msra.mxu0 %v152_v30  ;;  %669 = vmatpush1.msra.mxu1 %v516_v37  ;;  %v540_v30 = vld [vmem:[#allocation2 + $0x600] sm:$0xff]  ;;  %v615_v37 = vld [vmem:[#allocation2 + $0x858] sm:$0xff] }
  0x77   :  { %2165 = vmatprep.subr.mxu0 %v2354_v0  ;;  %670 = vmatprep.subr.mxu1 %v514_v38  ;;  %v613_v38 = vld [vmem:[#allocation2 + $0x848] sm:$0xff] }
  0x78   :  { %2166 = vmatpush3.msra.mxu0 %v149_v33  ;;  %671 = vmatpush1.msra.mxu1 %v513_v40  ;;  %v621_v33 = vld [vmem:[#allocation2 + $0x888] sm:$0xff]  ;;  %v610_v40 = vld [vmem:[#allocation2 + $0x830] sm:$0xff] }
  0x79   :  { %2167 = vmatprep.subr.mxu0 %v2354_v0  ;;  %672 = vmatprep.subr.mxu1 %v511_v41  ;;  %v609_v41 = vld [vmem:[#allocation2 + $0x828] sm:$0xff] }
  0x7a   :  { %2168 = vmatpush3.msra.mxu0 %v146_v36  ;;  %673 = vmatpush1.msra.mxu1 %v510_v42  ;;  %v616_v36 = vld [vmem:[#allocation2 + $0x860] sm:$0xff]  ;;  %v607_v42 = vld [vmem:[#allocation2 + $0x818] sm:$0xff] }
  0x7b   :  { %2169 = vmatprep.subr.mxu0 %v2354_v0  ;;  %674 = vmatprep.subr.mxu1 %v508_v43  ;;  %v606_v43 = vld [vmem:[#allocation2 + $0x810] sm:$0xff] }
  0x7c   :  { %2170 = vmatpush3.msra.mxu0 %v143_v39  ;;  %675 = vmatpush1.msra.mxu1 %v507_v44  ;;  %v612_v39 = vld [vmem:[#allocation2 + $0x840] sm:$0xff] }
  0x7d   :  { %2172 = vmatmul.mubr.f32.vlgmr.msra.gmra.mxu0 %v2387_v13  ;;  %676 = vmatprep.subr.mxu1 %v505_v45  ;;  %v495_v13 = vld [vmem:[#allocation2 + $0x498] sm:$0xff]  ;;  %v604_v44 = vld [vmem:[#allocation2 + $0x800] sm:$0xff] }
  0x7e   :  { %789 = vmatprep.mubr.f32.mxu0 %v2354_v0  ;;  %677 = vmatpush1.msra.mxu1 %v504_v46  ;;  %v603_v45 = vld [vmem:[#allocation2 + $0x7f8] sm:$0xff]  ;;  %v601_v46 = vld [vmem:[#allocation2 + $0x7e8] sm:$0xff] }
  0x7f   :  { %678 = vmatprep.subr.mxu1 %v502_v47  ;;  %725 = vmatprep.subr.mxu0 %v634_v17  ;;  %v600_v47 = vld [vmem:[#allocation2 + $0x7e0] sm:$0xff]  ;;  %v617_v17 = vld [vmem:[#allocation2 + $0x868] sm:$0xff] }
  0x80   :  { %679 = vmatpush1.msra.mxu1 %v501_v48  ;;  %726 = vmatpush1.msra.mxu0 %v633_v19  ;;  %v598_v48 = vld [vmem:[#allocation2 + $0x7d0] sm:$0xff] }
  0x81   :  { %680 = vmatprep.subr.mxu1 %v499_v49  ;;  %727 = vmatprep.subr.mxu0 %v631_v21  ;;  %v597_v49 = vld [vmem:[#allocation2 + $0x7c8] sm:$0xff]  ;;  %v614_v19 = vld [vmem:[#allocation2 + $0x850] sm:$0xff] }
  0x82   :  { %681 = vmatpush1.msra.mxu1 %v498_v50  ;;  %728 = vmatpush1.msra.mxu0 %v630_v23  ;;  %v595_v50 = vld [vmem:[#allocation2 + $0x7b8] sm:$0xff]  ;;  %v608_v23 = vld [vmem:[#allocation2 + $0x820] sm:$0xff] }
  0x83   :  { %682 = vmatprep.subr.mxu1 %v496_v51  ;;  %729 = vmatprep.subr.mxu0 %v628_v25  ;;  %v594_v51 = vld [vmem:[#allocation2 + $0x7b0] sm:$0xff] }
  0x84   :  { %683 = vmatpush1.msra.mxu1 %v495_v13  ;;  %730 = vmatpush1.msra.mxu0 %v627_v27  ;;  %v592_v13 = vld [vmem:[#allocation2 + $0x7a0] sm:$0xff]  ;;  %v602_v27 = vld [vmem:[#allocation2 + $0x7f0] sm:$0xff] }
  0x85   :  { %684 = vmatprep.subr.mxu1 %v493_v52  ;;  %731 = vmatprep.subr.mxu0 %v625_v29  ;;  %v591_v52 = vld [vmem:[#allocation2 + $0x798] sm:$0xff] }
  0x86   :  { %685 = vmatpush1.msra.mxu1 %v492_v53  ;;  %732 = vmatpush1.msra.mxu0 %v624_v31  ;;  %v589_v53 = vld [vmem:[#allocation2 + $0x788] sm:$0xff] }
  0x87   :  { %686 = vmatprep.subr.mxu1 %v586_v54  ;;  %733 = vmatprep.subr.mxu0 %v622_v32  ;;  %v588_v54 = vld [vmem:[#allocation2 + $0x780] sm:$0xff] }
  0x88   :  { %687 = vmatpush2.msra.mxu1 %v585_v55  ;;  %734 = vmatpush1.msra.mxu0 %v621_v33  ;;  %v587_v55 = vld [vmem:[#allocation2 + $0x778] sm:$0xff]  ;;  %v596_v33 = vld [vmem:[#allocation2 + $0x7c0] sm:$0xff] }
  0x89   :  { %688 = vmatprep.subr.mxu1 %v583_v56  ;;  %735 = vmatprep.subr.mxu0 %v619_v34  ;;  %v191_v56 = vlaneseq }
  0x8a   :  { %689 = vmatpush2.msra.mxu1 %v582_v57  ;;  %736 = vmatpush1.msra.mxu0 %v618_v35  ;;  %v539_v35 = vld [vmem:[#allocation2 + $0x5f8] sm:$0xff] }
  0x8b   :  { %690 = vmatprep.subr.mxu1 %v580_v58  ;;  %737 = vmatprep.subr.mxu0 %v616_v36  ;;  %v192_v57 = vshrl.u32 %v191_v56, 7  ;;  %v584_v36 = vld [vmem:[#allocation2 + $0x760] sm:$0xff] }
  0x8c   :  { %691 = vmatpush2.msra.mxu1 %v579_v59  ;;  %738 = vmatpush1.msra.mxu0 %v615_v37  ;;  %v189_v59 = vld [vmem:[#allocation4] sm:$0x7]  ;;  %v593_v37 = vld [vmem:[#allocation2 + $0x7a8] sm:$0xff] }
  0x8d   :  { %692 = vmatprep.subr.mxu1 %v577_v60  ;;  %739 = vmatprep.subr.mxu0 %v613_v38  ;;  %v2422_v58 = vsub.s32 0, %v192_v57  ;;  %v2424_v60 = vsub.s32 1, %v192_v57  ;;  %v536_v38 = vld [vmem:[#allocation2 + $0x5e0] sm:$0xff] }
  0x8e   :  { %693 = vmatpush2.msra.mxu1 %v576_v61  ;;  %740 = vmatpush1.msra.mxu0 %v612_v39  ;;  %v581_v39 = vld [vmem:[#allocation2 + $0x748] sm:$0xff] }
  0x8f   :  { %694 = vmatprep.subr.mxu1 %v574_v62  ;;  %741 = vmatprep.subr.mxu0 %v610_v40  ;;  %v194_v61 = vrot.slane %v189_v59, %v2422_v58  ;;  %v198_v62 = vrot.slane %v189_v59, %v2424_v60  ;;  %v590_v40 = vld [vmem:[#allocation2 + $0x790] sm:$0xff] }
  0x90   :  { %695 = vmatpush2.msra.mxu1 %v573_v63  ;;  %742 = vmatpush1.msra.mxu0 %v609_v41  ;;  %v533_v41 = vld [vmem:[#allocation2 + $0x5c8] sm:$0xff] }
  0x91   :  { %696 = vmatprep.subr.mxu1 %v571_v1  ;;  %743 = vmatprep.subr.mxu0 %v607_v42  ;;  %v578_v42 = vld [vmem:[#allocation2 + $0x730] sm:$0xff] }
  0x92   :  { %697 = vmatpush2.msra.mxu1 %v570_v2  ;;  %744 = vmatpush1.msra.mxu0 %v606_v43  ;;  %v530_v43 = vld [vmem:[#allocation2 + $0x5b0] sm:$0xff] }
  0x93   :  { %698 = vmatprep.subr.mxu1 %v568_v3  ;;  %745 = vmatprep.subr.mxu0 %v604_v44  ;;  %v575_v44 = vld [vmem:[#allocation2 + $0x718] sm:$0xff] }
  0x94   :  { %699 = vmatpush2.msra.mxu1 %v567_v4  ;;  %746 = vmatpush1.msra.mxu0 %v603_v45  ;;  %v527_v45 = vld [vmem:[#allocation2 + $0x598] sm:$0xff] }
  0x95   :  { %700 = vmatprep.subr.mxu1 %v565_v5  ;;  %747 = vmatprep.subr.mxu0 %v601_v46  ;;  %v572_v46 = vld [vmem:[#allocation2 + $0x700] sm:$0xff] }
  0x96   :  { %701 = vmatpush2.msra.mxu1 %v564_v6  ;;  %748 = vmatpush1.msra.mxu0 %v600_v47  ;;  %v524_v47 = vld [vmem:[#allocation2 + $0x580] sm:$0xff] }
  0x97   :  { %702 = vmatprep.subr.mxu1 %v562_v7  ;;  %749 = vmatprep.subr.mxu0 %v598_v48  ;;  %v569_v48 = vld [vmem:[#allocation2 + $0x6e8] sm:$0xff] }
  0x98   :  { %703 = vmatpush2.msra.mxu1 %v561_v8  ;;  %750 = vmatpush1.msra.mxu0 %v597_v49  ;;  %v521_v49 = vld [vmem:[#allocation2 + $0x568] sm:$0xff] }
  0x99   :  { %704 = vmatprep.subr.mxu1 %v559_v9  ;;  %751 = vmatprep.subr.mxu0 %v595_v50  ;;  %v566_v50 = vld [vmem:[#allocation2 + $0x6d0] sm:$0xff] }
  0x9a   :  { %705 = vmatpush2.msra.mxu1 %v558_v10  ;;  %752 = vmatpush1.msra.mxu0 %v594_v51  ;;  %v635_v10 = vld [vmem:[#allocation2 + $0x8f8] sm:$0xff]  ;;  %v518_v51 = vld [vmem:[#allocation2 + $0x550] sm:$0xff] }
  0x9b   :  { %706 = vmatprep.subr.mxu1 %v556_v11  ;;  %753 = vmatprep.subr.mxu0 %v592_v13  ;;  %v632_v11 = vld [vmem:[#allocation2 + $0x8e0] sm:$0xff]  ;;  %v563_v13 = vld [vmem:[#allocation2 + $0x6b8] sm:$0xff] }
  0x9c   :  { %707 = vmatpush2.msra.mxu1 %v555_v12  ;;  %754 = vmatpush1.msra.mxu0 %v591_v52  ;;  %v629_v12 = vld [vmem:[#allocation2 + $0x8c8] sm:$0xff]  ;;  %v515_v52 = vld [vmem:[#allocation2 + $0x538] sm:$0xff] }
  0x9d   :  { %708 = vmatprep.subr.mxu1 %v553_v14  ;;  %755 = vmatprep.subr.mxu0 %v589_v53  ;;  %v626_v14 = vld [vmem:[#allocation2 + $0x8b0] sm:$0xff]  ;;  %v560_v53 = vld [vmem:[#allocation2 + $0x6a0] sm:$0xff] }
  0x9e   :  { %709 = vmatpush2.msra.mxu1 %v552_v15  ;;  %756 = vmatpush1.msra.mxu0 %v588_v54  ;;  %v623_v15 = vld [vmem:[#allocation2 + $0x898] sm:$0xff]  ;;  %v512_v54 = vld [vmem:[#allocation2 + $0x520] sm:$0xff] }
  0x9f   :  { %710 = vmatprep.subr.mxu1 %v550_v16  ;;  %1983 = vmatprep.subr.mxu0 %v587_v55  ;;  %v620_v16 = vld [vmem:[#allocation2 + $0x880] sm:$0xff]  ;;  %v557_v55 = vld [vmem:[#allocation2 + $0x688] sm:$0xff] }
  0xa0   :  { %711 = vmatpush2.msra.mxu1 %v549_v18 }
  0xa1   :  { %712 = vmatprep.subr.mxu1 %v547_v20  ;;  %v2446_v20 = vsub.s32 2, %v192_v57  ;;  %v509_v57 = vld [vmem:[#allocation2 + $0x508] sm:$0xff] }
  0xa2   :  { %713 = vmatpush2.msra.mxu1 %v546_v22  ;;  %v611_v22 = vld [vmem:[#allocation2 + $0x838] sm:$0xff] }
  0xa3   :  { %714 = vmatprep.subr.mxu1 %v544_v24  ;;  %v202_v25 = vrot.slane %v189_v59, %v2446_v20  ;;  %v554_v59 = vld [vmem:[#allocation2 + $0x670] sm:$0xff] }
  0xa4   :  { %715 = vmatpush2.msra.mxu1 %v543_v26  ;;  %v605_v26 = vld [vmem:[#allocation2 + $0x808] sm:$0xff] }
  0xa5   :  { %716 = vmatprep.subr.mxu1 %v541_v28 }
  0xa6   :  { %717 = vmatpush2.msra.mxu1 %v540_v30  ;;  %v599_v30 = vld [vmem:[#allocation2 + $0x7d8] sm:$0xff] }
  0xa7   :  { %2174 = vmatprep.subr.mxu1 %v2354_v0 }
 0x102   :  { %v343_v63 = vpop.f32.mrf.mxu1 }
 0x104   :  { %v345_v5 = vpop.f32.mrf.mxu1 }
 0x11d   :  { %v272_v1 = vpop.f32.mrf.mxu0 }
 0x11e   :  { %v273_v2 = vadd.f32 %v272_v1, %v194_v61  ;;  %v506_v61 = vld [vmem:[#allocation2 + $0x4f0] sm:$0xff]  ;;  %v548_v1 = vld [vmem:[#allocation2 + $0x640] sm:$0xff] }
 0x11f   :  { %v274_v3 = vpop.f32.mrf.mxu0 }
 0x120   :  { %v275_v4 = vadd.f32 %v274_v3, %v198_v62  ;;  %v2428_v6 = vadd.f32 %v343_v63, %v273_v2  ;;  %v551_v62 = vld [vmem:[#allocation2 + $0x658] sm:$0xff]  ;;  %v500_v2 = vld [vmem:[#allocation2 + $0x4c0] sm:$0xff]  ;;  %v545_v3 = vld [vmem:[#allocation2 + $0x628] sm:$0xff] }
 0x121   :  { %v503_v63 = vld [vmem:[#allocation2 + $0x4d8] sm:$0xff] }
 0x122   :  { %v2430_v7 = vadd.f32 %v345_v5, %v275_v4  ;;  %v488_v9 = vmax.f32 %v2428_v6, 0.0  ;;  %v497_v4 = vld [vmem:[#allocation2 + $0x4a8] sm:$0xff]  ;;  %v542_v5 = vld [vmem:[#allocation2 + $0x610] sm:$0xff]  ;;  %v968_v6 = vld [vmem:[#allocation2 + $0x9e0] sm:$0xff] }
 0x124   :  { %v489_v8 = vmax.f32 %v2430_v7, 0.0  ;;  %v494_v7 = vld [vmem:[#allocation2 + $0x490] sm:$0xff] }
 0x125   :  { %v1963_v18 = vpop.f32.mrf.mxu1 }
 0x126   :  { %718 = vmatprep.mubr.f32.mxu1 %v489_v8 }
 0x127   :  { %719 = vmatmul.mubr.f32.vlgmr.msra.gmra.mxu1 %v488_v9  ;;  %v1964_v21 = vpop.f32.mrf.mxu1 }
 0x128   :  { %2175 = vmatpush3.msra.mxu1 %v635_v10  ;;  %2206 = vmatprep.mubr.msk.f32.mxu1 %vm2355_vm0, %v2354_v0  ;;  %v1965_v24 = vadd.f32 %v1964_v21, %v1963_v18  ;;  %v985_v10 = vld [vmem:[#allocation2 + $0xa68] sm:$0xff]  ;;  %v974_v18 = vld [vmem:[#allocation2 + $0xa10] sm:$0xff]  ;;  %v971_v21 = vld [vmem:[#allocation2 + $0x9f8] sm:$0xff] }
 0x129   :  { %2176 = vmatprep.subr.mxu1 %v2354_v0 }
 0x12a   :  { %2177 = vmatpush3.msra.mxu1 %v632_v11  ;;  %v415_v28 = vadd.f32 %v1965_v24, %v202_v25  ;;  %v983_v11 = vld [vmem:[#allocation2 + $0xa58] sm:$0xff]  ;;  %v964_v24 = vld [vmem:[#allocation2 + $0x9c0] sm:$0xff]  ;;  %v962_v25 = vld [vmem:[#allocation2 + $0x9b0] sm:$0xff] }
 0x12b   :  { %2178 = vmatprep.subr.mxu1 %v2354_v0 }
 0x12c   :  { %2179 = vmatpush3.msra.mxu1 %v629_v12  ;;  %v982_v12 = vld [vmem:[#allocation2 + $0xa50] sm:$0xff] }
 0x12d   :  { %2180 = vmatprep.subr.mxu1 %v2354_v0 }
 0x12e   :  { %2181 = vmatpush3.msra.mxu1 %v626_v14  ;;  %v980_v14 = vld [vmem:[#allocation2 + $0xa40] sm:$0xff] }
 0x12f   :  { %2182 = vmatprep.subr.mxu1 %v2354_v0 }
 0x130   :  { %2183 = vmatpush3.msra.mxu1 %v623_v15  ;;  %v979_v15 = vld [vmem:[#allocation2 + $0xa38] sm:$0xff] }
 0x131   :  { %2184 = vmatprep.subr.mxu1 %v2354_v0 }
 0x132   :  { %2185 = vmatpush3.msra.mxu1 %v620_v16  ;;  %v977_v16 = vld [vmem:[#allocation2 + $0xa28] sm:$0xff] }
 0x133   :  { %2186 = vmatprep.subr.mxu1 %v2354_v0 }
 0x134   :  { %2187 = vmatpush3.msra.mxu1 %v617_v17  ;;  %v976_v17 = vld [vmem:[#allocation2 + $0xa20] sm:$0xff] }
 0x135   :  { %2188 = vmatprep.subr.mxu1 %v2354_v0 }
 0x136   :  { %2189 = vmatpush3.msra.mxu1 %v614_v19  ;;  %v973_v19 = vld [vmem:[#allocation2 + $0xa08] sm:$0xff] }
 0x137   :  { %2190 = vmatprep.subr.mxu1 %v2354_v0 }
 0x138   :  { %2191 = vmatpush3.msra.mxu1 %v611_v22  ;;  %v970_v22 = vld [vmem:[#allocation2 + $0x9f0] sm:$0xff] }
 0x139   :  { %2192 = vmatprep.subr.mxu1 %v2354_v0 }
 0x13a   :  { %2193 = vmatpush3.msra.mxu1 %v608_v23  ;;  %v965_v23 = vld [vmem:[#allocation2 + $0x9c8] sm:$0xff] }
 0x13b   :  { %2194 = vmatprep.subr.mxu1 %v2354_v0 }
 0x13c   :  { %2195 = vmatpush3.msra.mxu1 %v605_v26  ;;  %v961_v26 = vld [vmem:[#allocation2 + $0x9a8] sm:$0xff] }
 0x13d   :  { %2196 = vmatprep.subr.mxu1 %v2354_v0  ;;  %v484_v29 = vpop.f32.mrf.mxu0 }
 0x13e   :  { %v485_v31 = vadd.f32 %v484_v29, %v415_v28  ;;  %2197 = vmatpush3.msra.mxu1 %v602_v27  ;;  %v959_v27 = vld [vmem:[#allocation2 + $0x998] sm:$0xff]  ;;  %v958_v28 = vld [vmem:[#allocation2 + $0x990] sm:$0xff]  ;;  %v956_v29 = vld [vmem:[#allocation2 + $0x980] sm:$0xff] }
 0x13f   :  { %2198 = vmatprep.subr.mxu1 %v2354_v0  ;;  %v2173_v32 = vpop.f32.mrf.mxu0 }
 0x140   :  { %v490_v34 = vmax.f32 %v485_v31, 0.0  ;;  %2199 = vmatpush3.msra.mxu1 %v599_v30  ;;  %v955_v30 = vld [vmem:[#allocation2 + $0x978] sm:$0xff]  ;;  %v953_v31 = vld [vmem:[#allocation2 + $0x968] sm:$0xff]  ;;  %v952_v32 = vld [vmem:[#allocation2 + $0x960] sm:$0xff] }
 0x141   :  { %2200 = vmatprep.subr.mxu1 %v2354_v0 }
 0x142   :  { %2201 = vmatpush3.msra.mxu1 %v596_v33  ;;  %790 = vmatmul.mubr.f32.vlgmr.msra.gmra.mxu0 %v490_v34  ;;  %v950_v33 = vld [vmem:[#allocation2 + $0x950] sm:$0xff] }
 0x143   :  { %1984 = vmatpush3.msra.mxu0 %v539_v35  ;;  %2202 = vmatprep.subr.mxu1 %v2354_v0  ;;  %v947_v35 = vld [vmem:[#allocation2 + $0x938] sm:$0xff] }
 0x144   :  { %1985 = vmatprep.subr.mxu0 %v584_v36  ;;  %860 = vmatprep.mubr.f32.mxu0 %v489_v8  ;;  %v986_v8 = vld [vmem:[#allocation2 + $0xa70] sm:$0xff] }
 0x145   :  { %2203 = vmatpush3.msra.mxu1 %v593_v37  ;;  %1986 = vmatpush3.msra.mxu0 %v536_v38  ;;  %v946_v36 = vld [vmem:[#allocation2 + $0x930] sm:$0xff]  ;;  %v944_v37 = vld [vmem:[#allocation2 + $0x920] sm:$0xff]  ;;  %v943_v38 = vld [vmem:[#allocation2 + $0x918] sm:$0xff] }
 0x146   :  { %2204 = vmatprep.subr.mxu1 %v2354_v0  ;;  %1987 = vmatprep.subr.mxu0 %v581_v39  ;;  %v941_v39 = vld [vmem:[#allocation2 + $0x908] sm:$0xff] }
 0x147   :  { %2205 = vmatpush3.msra.mxu1 %v590_v40  ;;  %1988 = vmatpush3.msra.mxu0 %v533_v41  ;;  %v940_v40 = vld [vmem:[#allocation2 + $0x900] sm:$0xff]  ;;  %v1034_v41 = vld [vmem:[#allocation2 + $0xbf0] sm:$0xff] }
 0x148   :  { %2207 = vmatmul.mubr.f32.vlgmr.msra.gmra.mxu1 %v490_v34  ;;  %1989 = vmatprep.subr.mxu0 %v578_v42  ;;  %v949_v34 = vld [vmem:[#allocation2 + $0x948] sm:$0xff] }
 0x149   :  { %1990 = vmatpush3.msra.mxu0 %v530_v43  ;;  %1237 = vmatprep.mubr.f32.mxu1 %v2354_v0  ;;  %v1033_v42 = vld [vmem:[#allocation2 + $0xbe8] sm:$0xff]  ;;  %v1031_v43 = vld [vmem:[#allocation2 + $0xbd8] sm:$0xff] }
 0x14a   :  { %1991 = vmatprep.subr.mxu0 %v575_v44  ;;  %v1030_v44 = vld [vmem:[#allocation2 + $0xbd0] sm:$0xff] }
 0x14b   :  { %1992 = vmatpush3.msra.mxu0 %v527_v45  ;;  %v1028_v45 = vld [vmem:[#allocation2 + $0xbc0] sm:$0xff] }
 0x14c   :  { %1993 = vmatprep.subr.mxu0 %v572_v46  ;;  %v1027_v46 = vld [vmem:[#allocation2 + $0xbb8] sm:$0xff] }
 0x14d   :  { %1994 = vmatpush3.msra.mxu0 %v524_v47  ;;  %v1025_v47 = vld [vmem:[#allocation2 + $0xba8] sm:$0xff] }
 0x14e   :  { %1995 = vmatprep.subr.mxu0 %v569_v48  ;;  %v1024_v48 = vld [vmem:[#allocation2 + $0xba0] sm:$0xff] }
 0x14f   :  { %1996 = vmatpush3.msra.mxu0 %v521_v49  ;;  %v1022_v49 = vld [vmem:[#allocation2 + $0xb90] sm:$0xff] }
 0x150   :  { %1997 = vmatprep.subr.mxu0 %v566_v50  ;;  %v1021_v50 = vld [vmem:[#allocation2 + $0xb88] sm:$0xff] }
 0x151   :  { %1998 = vmatpush3.msra.mxu0 %v518_v51  ;;  %v1019_v51 = vld [vmem:[#allocation2 + $0xb78] sm:$0xff] }
 0x152   :  { %1999 = vmatprep.subr.mxu0 %v563_v13  ;;  %v1018_v13 = vld [vmem:[#allocation2 + $0xb70] sm:$0xff] }
 0x153   :  { %2000 = vmatpush3.msra.mxu0 %v515_v52  ;;  %v1082_v52 = vld [vmem:[#allocation2 + $0xd70] sm:$0xff] }
 0x154   :  { %2001 = vmatprep.subr.mxu0 %v560_v53  ;;  %v1081_v53 = vld [vmem:[#allocation2 + $0xd68] sm:$0xff]  ;;  %1173 = vmatprep.subr.mxu1 %v1082_v52 }
 0x155   :  { %2002 = vmatpush3.msra.mxu0 %v512_v54  ;;  %v1016_v54 = vld [vmem:[#allocation2 + $0xb60] sm:$0xff]  ;;  %1174 = vmatpush1.msra.mxu1 %v1081_v53 }
 0x156   :  { %2003 = vmatprep.subr.mxu0 %v557_v55  ;;  %v1079_v55 = vld [vmem:[#allocation2 + $0xd58] sm:$0xff] }
 0x157   :  { %2004 = vmatpush3.msra.mxu0 %v509_v57  ;;  %v1078_v57 = vld [vmem:[#allocation2 + $0xd50] sm:$0xff]  ;;  %1175 = vmatprep.subr.mxu1 %v1079_v55 }
 0x158   :  { %2005 = vmatprep.subr.mxu0 %v554_v59  ;;  %v1015_v59 = vld [vmem:[#allocation2 + $0xb58] sm:$0xff]  ;;  %1176 = vmatpush1.msra.mxu1 %v1078_v57 }
 0x159   :  { %2006 = vmatpush3.msra.mxu0 %v506_v61  ;;  %v1076_v61 = vld [vmem:[#allocation2 + $0xd40] sm:$0xff] }
 0x15a   :  { %2007 = vmatprep.subr.mxu0 %v551_v62  ;;  %v1013_v62 = vld [vmem:[#allocation2 + $0xb48] sm:$0xff]  ;;  %1177 = vmatprep.subr.mxu1 %v1076_v61 }
 0x15b   :  { %2008 = vmatpush3.msra.mxu0 %v503_v63  ;;  %v1075_v63 = vld [vmem:[#allocation2 + $0xd38] sm:$0xff] }
 0x15c   :  { %2009 = vmatprep.subr.mxu0 %v548_v1  ;;  %v1012_v1 = vld [vmem:[#allocation2 + $0xb40] sm:$0xff]  ;;  %1178 = vmatpush1.msra.mxu1 %v1075_v63  ;;  %v1083_v63 = vld [vmem:[#allocation2 + $0xd78] sm:$0xff] }
 0x15d   :  { %2010 = vmatpush3.msra.mxu0 %v500_v2  ;;  %v1073_v2 = vld [vmem:[#allocation2 + $0xd28] sm:$0xff] }
 0x15e   :  { %2011 = vmatprep.subr.mxu0 %v545_v3  ;;  %v1010_v3 = vld [vmem:[#allocation2 + $0xb30] sm:$0xff]  ;;  %1179 = vmatprep.subr.mxu1 %v1073_v2  ;;  %v1080_v2 = vld [vmem:[#allocation2 + $0xd60] sm:$0xff] }
 0x15f   :  { %2012 = vmatpush3.msra.mxu0 %v497_v4  ;;  %v1072_v4 = vld [vmem:[#allocation2 + $0xd20] sm:$0xff] }
 0x160   :  { %2013 = vmatprep.subr.mxu0 %v542_v5  ;;  %v1009_v5 = vld [vmem:[#allocation2 + $0xb28] sm:$0xff]  ;;  %1180 = vmatpush1.msra.mxu1 %v1072_v4  ;;  %v1074_v4 = vld [vmem:[#allocation2 + $0xd30] sm:$0xff] }
 0x161   :  { %2014 = vmatpush3.msra.mxu0 %v494_v7  ;;  %v1070_v7 = vld [vmem:[#allocation2 + $0xd10] sm:$0xff] }
 0x162   :  { %861 = vmatmul.mubr.f32.vlgmr.msra.gmra.mxu0 %v488_v9  ;;  %1102 = vmatprep.subr.mxu0 %v986_v8  ;;  %v967_v9 = vld [vmem:[#allocation2 + $0x9d8] sm:$0xff] }
 0x163   :  { %1103 = vmatpush1.msra.mxu0 %v985_v10  ;;  %v1007_v8 = vld [vmem:[#allocation2 + $0xb18] sm:$0xff]  ;;  %v1069_v10 = vld [vmem:[#allocation2 + $0xd08] sm:$0xff]  ;;  %1181 = vmatprep.subr.mxu1 %v1070_v7  ;;  %v1068_v7 = vld [vmem:[#allocation2 + $0xd00] sm:$0xff] }
 0x164   :  { %1104 = vmatprep.subr.mxu0 %v983_v11  ;;  %v1006_v11 = vld [vmem:[#allocation2 + $0xb10] sm:$0xff]  ;;  %1182 = vmatpush1.msra.mxu1 %v1069_v10 }
 0x165   :  { %1105 = vmatpush1.msra.mxu0 %v982_v12  ;;  %v1067_v12 = vld [vmem:[#allocation2 + $0xcf8] sm:$0xff]  ;;  %v1062_v10 = vld [vmem:[#allocation2 + $0xcd0] sm:$0xff] }
 0x166   :  { %1106 = vmatprep.subr.mxu0 %v980_v14  ;;  %v1004_v14 = vld [vmem:[#allocation2 + $0xb00] sm:$0xff]  ;;  %1183 = vmatprep.subr.mxu1 %v1067_v12 }
 0x167   :  { %1107 = vmatpush1.msra.mxu0 %v979_v15  ;;  %v1066_v15 = vld [vmem:[#allocation2 + $0xcf0] sm:$0xff]  ;;  %v1056_v12 = vld [vmem:[#allocation2 + $0xca0] sm:$0xff] }
 0x168   :  { %1108 = vmatprep.subr.mxu0 %v977_v16  ;;  %v1003_v16 = vld [vmem:[#allocation2 + $0xaf8] sm:$0xff]  ;;  %1184 = vmatpush1.msra.mxu1 %v1066_v15  ;;  %v1050_v15 = vld [vmem:[#allocation2 + $0xc70] sm:$0xff] }
 0x169   :  { %1109 = vmatpush1.msra.mxu0 %v976_v17  ;;  %v1064_v17 = vld [vmem:[#allocation2 + $0xce0] sm:$0xff] }
 0x16a   :  { %1110 = vmatprep.subr.mxu0 %v974_v18  ;;  %v1001_v18 = vld [vmem:[#allocation2 + $0xae8] sm:$0xff]  ;;  %1185 = vmatprep.subr.mxu1 %v1064_v17 }
 0x16b   :  { %1111 = vmatpush1.msra.mxu0 %v973_v19  ;;  %v1063_v19 = vld [vmem:[#allocation2 + $0xcd8] sm:$0xff] }
 0x16c   :  { %1112 = vmatprep.subr.mxu0 %v971_v21  ;;  %v1000_v21 = vld [vmem:[#allocation2 + $0xae0] sm:$0xff]  ;;  %1186 = vmatpush1.msra.mxu1 %v1063_v19 }
 0x16d   :  { %1113 = vmatpush1.msra.mxu0 %v970_v22  ;;  %v1061_v22 = vld [vmem:[#allocation2 + $0xcc8] sm:$0xff] }
 0x16e   :  { %1114 = vmatprep.subr.mxu0 %v968_v6  ;;  %v998_v6 = vld [vmem:[#allocation2 + $0xad0] sm:$0xff]  ;;  %1187 = vmatprep.subr.mxu1 %v1061_v22  ;;  %v1041_v22 = vld [vmem:[#allocation2 + $0xc28] sm:$0xff] }
 0x16f   :  { %1115 = vmatpush1.msra.mxu0 %v967_v9  ;;  %v1060_v9 = vld [vmem:[#allocation2 + $0xcc0] sm:$0xff] }
 0x170   :  { %1116 = vmatprep.subr.mxu0 %v965_v23  ;;  %v997_v23 = vld [vmem:[#allocation2 + $0xac8] sm:$0xff]  ;;  %1188 = vmatpush1.msra.mxu1 %v1060_v9  ;;  %v1038_v9 = vld [vmem:[#allocation2 + $0xc10] sm:$0xff] }
 0x171   :  { %1117 = vmatpush1.msra.mxu0 %v964_v24  ;;  %v1058_v24 = vld [vmem:[#allocation2 + $0xcb0] sm:$0xff] }
 0x172   :  { %1118 = vmatprep.subr.mxu0 %v962_v25  ;;  %v995_v25 = vld [vmem:[#allocation2 + $0xab8] sm:$0xff]  ;;  %1189 = vmatprep.subr.mxu1 %v1058_v24 }
 0x173   :  { %1119 = vmatpush1.msra.mxu0 %v961_v26  ;;  %v1057_v26 = vld [vmem:[#allocation2 + $0xca8] sm:$0xff] }
 0x174   :  { %1120 = vmatprep.subr.mxu0 %v959_v27  ;;  %v994_v27 = vld [vmem:[#allocation2 + $0xab0] sm:$0xff]  ;;  %1190 = vmatpush1.msra.mxu1 %v1057_v26  ;;  %v987_v26 = vld [vmem:[#allocation2 + $0xa78] sm:$0xff] }
 0x175   :  { %1121 = vmatpush1.msra.mxu0 %v958_v28  ;;  %v1055_v28 = vld [vmem:[#allocation2 + $0xc98] sm:$0xff] }
 0x176   :  { %1122 = vmatprep.subr.mxu0 %v956_v29  ;;  %v992_v29 = vld [vmem:[#allocation2 + $0xaa0] sm:$0xff]  ;;  %1191 = vmatprep.subr.mxu1 %v1055_v28 }
 0x177   :  { %1123 = vmatpush1.msra.mxu0 %v955_v30  ;;  %v1054_v30 = vld [vmem:[#allocation2 + $0xc90] sm:$0xff]  ;;  %v984_v28 = vld [vmem:[#allocation2 + $0xa60] sm:$0xff] }
 0x178   :  { %1124 = vmatprep.subr.mxu0 %v953_v31  ;;  %v991_v31 = vld [vmem:[#allocation2 + $0xa98] sm:$0xff]  ;;  %1192 = vmatpush1.msra.mxu1 %v1054_v30  ;;  %v981_v30 = vld [vmem:[#allocation2 + $0xa48] sm:$0xff] }
 0x179   :  { %1125 = vmatpush1.msra.mxu0 %v952_v32  ;;  %v1052_v32 = vld [vmem:[#allocation2 + $0xc80] sm:$0xff] }
 0x17a   :  { %1126 = vmatprep.subr.mxu0 %v950_v33  ;;  %v989_v33 = vld [vmem:[#allocation2 + $0xa88] sm:$0xff]  ;;  %1193 = vmatprep.subr.mxu1 %v1052_v32  ;;  %v978_v32 = vld [vmem:[#allocation2 + $0xa30] sm:$0xff] }
 0x17b   :  { %1127 = vmatpush1.msra.mxu0 %v949_v34  ;;  %v1051_v34 = vld [vmem:[#allocation2 + $0xc78] sm:$0xff] }
 0x17c   :  { %1128 = vmatprep.subr.mxu0 %v947_v35  ;;  %v988_v35 = vld [vmem:[#allocation2 + $0xa80] sm:$0xff]  ;;  %1194 = vmatpush1.msra.mxu1 %v1051_v34  ;;  %v975_v34 = vld [vmem:[#allocation2 + $0xa18] sm:$0xff] }
 0x17d   :  { %1129 = vmatpush1.msra.mxu0 %v946_v36  ;;  %v1049_v36 = vld [vmem:[#allocation2 + $0xc68] sm:$0xff] }
 0x17e   :  { %1130 = vmatprep.subr.mxu0 %v944_v37  ;;  %v1048_v37 = vld [vmem:[#allocation2 + $0xc60] sm:$0xff]  ;;  %1195 = vmatprep.subr.mxu1 %v1049_v36 }
 0x17f   :  { %1131 = vmatpush1.msra.mxu0 %v943_v38  ;;  %1196 = vmatpush1.msra.mxu1 %v1048_v37  ;;  %v1046_v38 = vld [vmem:[#allocation2 + $0xc50] sm:$0xff]  ;;  %v972_v36 = vld [vmem:[#allocation2 + $0xa00] sm:$0xff]  ;;  %v1017_v37 = vld [vmem:[#allocation2 + $0xb68] sm:$0xff] }
 0x180   :  { %1132 = vmatprep.subr.mxu0 %v941_v39  ;;  %1197 = vmatprep.subr.mxu1 %v1046_v38  ;;  %v1045_v39 = vld [vmem:[#allocation2 + $0xc48] sm:$0xff] }
 0x181   :  { %1133 = vmatpush1.msra.mxu0 %v940_v40  ;;  %1198 = vmatpush1.msra.mxu1 %v1045_v39  ;;  %v1043_v40 = vld [vmem:[#allocation2 + $0xc38] sm:$0xff]  ;;  %v969_v38 = vld [vmem:[#allocation2 + $0x9e8] sm:$0xff]  ;;  %v1014_v39 = vld [vmem:[#allocation2 + $0xb50] sm:$0xff] }
 0x182   :  { %1134 = vmatprep.subr.mxu0 %v1034_v41  ;;  %1199 = vmatprep.subr.mxu1 %v1043_v40  ;;  %v1042_v41 = vld [vmem:[#allocation2 + $0xc30] sm:$0xff] }
 0x183   :  { %1135 = vmatpush2.msra.mxu0 %v1033_v42  ;;  %1200 = vmatpush1.msra.mxu1 %v1042_v41  ;;  %v1040_v42 = vld [vmem:[#allocation2 + $0xc20] sm:$0xff]  ;;  %v966_v40 = vld [vmem:[#allocation2 + $0x9d0] sm:$0xff]  ;;  %v1011_v41 = vld [vmem:[#allocation2 + $0xb38] sm:$0xff] }
 0x184   :  { %1136 = vmatprep.subr.mxu0 %v1031_v43  ;;  %1201 = vmatprep.subr.mxu1 %v1040_v42  ;;  %v1039_v43 = vld [vmem:[#allocation2 + $0xc18] sm:$0xff] }
 0x185   :  { %1137 = vmatpush2.msra.mxu0 %v1030_v44  ;;  %1202 = vmatpush1.msra.mxu1 %v1039_v43  ;;  %v1037_v44 = vld [vmem:[#allocation2 + $0xc08] sm:$0xff]  ;;  %v963_v42 = vld [vmem:[#allocation2 + $0x9b8] sm:$0xff]  ;;  %v1008_v43 = vld [vmem:[#allocation2 + $0xb20] sm:$0xff] }
 0x186   :  { %1138 = vmatprep.subr.mxu0 %v1028_v45  ;;  %1203 = vmatprep.subr.mxu1 %v1037_v44  ;;  %v1036_v45 = vld [vmem:[#allocation2 + $0xc00] sm:$0xff] }
 0x187   :  { %1139 = vmatpush2.msra.mxu0 %v1027_v46  ;;  %v1035_v46 = vld [vmem:[#allocation2 + $0xbf8] sm:$0xff]  ;;  %1204 = vmatpush1.msra.mxu1 %v1036_v45  ;;  %v960_v44 = vld [vmem:[#allocation2 + $0x9a0] sm:$0xff]  ;;  %v1005_v45 = vld [vmem:[#allocation2 + $0xb08] sm:$0xff] }
 0x188   :  { %1140 = vmatprep.subr.mxu0 %v1025_v47  ;;  %2035 = vmatprep.subr.mxu1 %v1035_v46  ;;  %v2464_v47 = vld [vmem:[#allocation4 + $0x3] sm:$0x7]  ;;  %v957_v46 = vld [vmem:[#allocation2 + $0x988] sm:$0xff] }
 0x189   :  { %1141 = vmatpush2.msra.mxu0 %v1024_v48  ;;  %v650_v19 = vrot.slane %v2464_v47, %v2446_v20 }
 0x18a   :  { %1142 = vmatprep.subr.mxu0 %v1022_v49  ;;  %v642_v49 = vrot.slane %v2464_v47, %v2422_v58 }
 0x18b   :  { %1143 = vmatpush2.msra.mxu0 %v1021_v50  ;;  %v646_v50 = vrot.slane %v2464_v47, %v2424_v60  ;;  %v1002_v47 = vld [vmem:[#allocation2 + $0xaf0] sm:$0xff] }
 0x18c   :  { %1144 = vmatprep.subr.mxu0 %v1019_v51 }
 0x18d   :  { %1145 = vmatpush2.msra.mxu0 %v1018_v13 }
 0x18e   :  { %1146 = vmatprep.subr.mxu0 %v1016_v54 }
 0x18f   :  { %1147 = vmatpush2.msra.mxu0 %v1015_v59 }
 0x190   :  { %1148 = vmatprep.subr.mxu0 %v1013_v62 }
 0x191   :  { %1149 = vmatpush2.msra.mxu0 %v1012_v1 }
 0x192   :  { %1150 = vmatprep.subr.mxu0 %v1010_v3  ;;  %v1077_v3 = vld [vmem:[#allocation2 + $0xd48] sm:$0xff] }
 0x193   :  { %1151 = vmatpush2.msra.mxu0 %v1009_v5  ;;  %v1071_v5 = vld [vmem:[#allocation2 + $0xd18] sm:$0xff] }
 0x194   :  { %1152 = vmatprep.subr.mxu0 %v1007_v8  ;;  %v1065_v8 = vld [vmem:[#allocation2 + $0xce8] sm:$0xff] }
 0x195   :  { %1153 = vmatpush2.msra.mxu0 %v1006_v11  ;;  %v1059_v11 = vld [vmem:[#allocation2 + $0xcb8] sm:$0xff] }
 0x196   :  { %1154 = vmatprep.subr.mxu0 %v1004_v14  ;;  %v1053_v14 = vld [vmem:[#allocation2 + $0xc88] sm:$0xff] }
 0x197   :  { %1155 = vmatpush2.msra.mxu0 %v1003_v16  ;;  %v1047_v16 = vld [vmem:[#allocation2 + $0xc58] sm:$0xff] }
 0x198   :  { %1156 = vmatprep.subr.mxu0 %v1001_v18  ;;  %v1044_v18 = vld [vmem:[#allocation2 + $0xc40] sm:$0xff] }
 0x199   :  { %1157 = vmatpush2.msra.mxu0 %v1000_v21 }
 0x19a   :  { %1158 = vmatprep.subr.mxu0 %v998_v6 }
 0x19b   :  { %1159 = vmatpush2.msra.mxu0 %v997_v23 }
 0x19c   :  { %1160 = vmatprep.subr.mxu0 %v995_v25 }
 0x19d   :  { %1161 = vmatpush2.msra.mxu0 %v994_v27  ;;  %v1032_v27 = vld [vmem:[#allocation2 + $0xbe0] sm:$0xff] }
 0x19e   :  { %1162 = vmatprep.subr.mxu0 %v992_v29  ;;  %v1029_v29 = vld [vmem:[#allocation2 + $0xbc8] sm:$0xff] }
 0x19f   :  { %1163 = vmatpush2.msra.mxu0 %v991_v31  ;;  %v1026_v31 = vld [vmem:[#allocation2 + $0xbb0] sm:$0xff] }
 0x1a0   :  { %1164 = vmatprep.subr.mxu0 %v989_v33  ;;  %v1023_v33 = vld [vmem:[#allocation2 + $0xb98] sm:$0xff] }
 0x1a1   :  { %1165 = vmatpush2.msra.mxu0 %v988_v35  ;;  %v1020_v35 = vld [vmem:[#allocation2 + $0xb80] sm:$0xff] }
 0x1a2   :  { %2209 = vmatprep.subr.mxu0 %v2354_v0 }
 0x1e7   :  { %v720_v48 = vpop.f32.mrf.mxu1 }
 0x1e8   :  { %v721_v13 = vadd.f32 %v720_v48, %v642_v49  ;;  %v954_v48 = vld [vmem:[#allocation2 + $0x970] sm:$0xff]  ;;  %v999_v49 = vld [vmem:[#allocation2 + $0xad8] sm:$0xff] }
 0x1e9   :  { %v722_v51 = vpop.f32.mrf.mxu1 }
 0x1ea   :  { %v723_v53 = vadd.f32 %v722_v51, %v646_v50  ;;  %v951_v50 = vld [vmem:[#allocation2 + $0x958] sm:$0xff]  ;;  %v996_v51 = vld [vmem:[#allocation2 + $0xac0] sm:$0xff] }
 0x202   :  { %v791_v52 = vpop.f32.mrf.mxu0 }
 0x203   :  { %v2470_v54 = vadd.f32 %v791_v52, %v721_v13  ;;  %v948_v13 = vld [vmem:[#allocation2 + $0x940] sm:$0xff]  ;;  %v993_v52 = vld [vmem:[#allocation2 + $0xaa8] sm:$0xff] }
 0x204   :  { %v793_v55 = vpop.f32.mrf.mxu0 }
 0x205   :  { %v2472_v57 = vadd.f32 %v793_v55, %v723_v53  ;;  %v936_v61 = vmax.f32 %v2470_v54, 0.0  ;;  %v945_v53 = vld [vmem:[#allocation2 + $0x928] sm:$0xff]  ;;  %v990_v55 = vld [vmem:[#allocation2 + $0xa90] sm:$0xff]  ;;  %v1416_v54 = vld [vmem:[#allocation2 + $0xe60] sm:$0xff] }
 0x207   :  { %v937_v59 = vmax.f32 %v2472_v57, 0.0  ;;  %v942_v57 = vld [vmem:[#allocation2 + $0x910] sm:$0xff] }
 0x208   :  { %v932_v62 = vpop.f32.mrf.mxu1 }
 0x209   :  { %1166 = vmatprep.mubr.f32.mxu0 %v937_v59 }
 0x20a   :  { %v2208_v1 = vpop.f32.mrf.mxu1  ;;  %1167 = vmatmul.mubr.f32.vlgmr.msra.gmra.mxu0 %v936_v61 }
 0x20b   :  { %2210 = vmatpush3.msra.mxu0 %v1083_v63  ;;  %2241 = vmatprep.mubr.msk.f32.mxu0 %vm2355_vm0, %v2354_v0  ;;  %v1431_v63 = vld [vmem:[#allocation2 + $0xed8] sm:$0xff]  ;;  %v1430_v1 = vld [vmem:[#allocation2 + $0xed0] sm:$0xff] }
 0x20c   :  { %2211 = vmatprep.subr.mxu0 %v2354_v0 }
 0x20d   :  { %2212 = vmatpush3.msra.mxu0 %v1080_v2  ;;  %v1428_v2 = vld [vmem:[#allocation2 + $0xec0] sm:$0xff] }
 0x20e   :  { %2213 = vmatprep.subr.mxu0 %v2354_v0 }
 0x20f   :  { %2214 = vmatpush3.msra.mxu0 %v1077_v3  ;;  %v1427_v3 = vld [vmem:[#allocation2 + $0xeb8] sm:$0xff] }
 0x210   :  { %2215 = vmatprep.subr.mxu0 %v2354_v0 }
 0x211   :  { %2216 = vmatpush3.msra.mxu0 %v1074_v4  ;;  %v1425_v4 = vld [vmem:[#allocation2 + $0xea8] sm:$0xff] }
 0x212   :  { %2217 = vmatprep.subr.mxu0 %v2354_v0 }
 0x213   :  { %2218 = vmatpush3.msra.mxu0 %v1071_v5  ;;  %v1424_v5 = vld [vmem:[#allocation2 + $0xea0] sm:$0xff] }
 0x214   :  { %2219 = vmatprep.subr.mxu0 %v2354_v0 }
 0x215   :  { %2220 = vmatpush3.msra.mxu0 %v1068_v7  ;;  %v1422_v7 = vld [vmem:[#allocation2 + $0xe90] sm:$0xff] }
 0x216   :  { %2221 = vmatprep.subr.mxu0 %v2354_v0 }
 0x217   :  { %2222 = vmatpush3.msra.mxu0 %v1065_v8  ;;  %v1421_v8 = vld [vmem:[#allocation2 + $0xe88] sm:$0xff] }
 0x218   :  { %2223 = vmatprep.subr.mxu0 %v2354_v0 }
 0x219   :  { %2224 = vmatpush3.msra.mxu0 %v1062_v10  ;;  %v1419_v10 = vld [vmem:[#allocation2 + $0xe78] sm:$0xff] }
 0x21a   :  { %2225 = vmatprep.subr.mxu0 %v2354_v0 }
 0x21b   :  { %2226 = vmatpush3.msra.mxu0 %v1059_v11  ;;  %v1418_v11 = vld [vmem:[#allocation2 + $0xe70] sm:$0xff] }
 0x21c   :  { %2227 = vmatprep.subr.mxu0 %v2354_v0 }
 0x21d   :  { %2228 = vmatpush3.msra.mxu0 %v1056_v12  ;;  %v1413_v12 = vld [vmem:[#allocation2 + $0xe48] sm:$0xff] }
 0x21e   :  { %2229 = vmatprep.subr.mxu0 %v2354_v0 }
 0x21f   :  { %2230 = vmatpush3.msra.mxu0 %v1053_v14  ;;  %v1412_v14 = vld [vmem:[#allocation2 + $0xe40] sm:$0xff] }
 0x220   :  { %2231 = vmatprep.subr.mxu0 %v2354_v0 }
 0x221   :  { %2232 = vmatpush3.msra.mxu0 %v1050_v15  ;;  %v1410_v15 = vld [vmem:[#allocation2 + $0xe30] sm:$0xff] }
 0x222   :  { %v2015_v17 = vpop.f32.mrf.mxu0  ;;  %2233 = vmatprep.subr.mxu0 %v2354_v0 }
 0x223   :  { %2234 = vmatpush3.msra.mxu0 %v1047_v16  ;;  %v1409_v16 = vld [vmem:[#allocation2 + $0xe28] sm:$0xff] }
 0x224   :  { %v2016_v21 = vpop.f32.mrf.mxu0  ;;  %2235 = vmatprep.subr.mxu0 %v2354_v0 }
 0x225   :  { %v2017_v6 = vadd.f32 %v2016_v21, %v2015_v17  ;;  %2236 = vmatpush3.msra.mxu0 %v1044_v18  ;;  %v1407_v17 = vld [vmem:[#allocation2 + $0xe18] sm:$0xff]  ;;  %v1406_v18 = vld [vmem:[#allocation2 + $0xe10] sm:$0xff] }
 0x226   :  { %2237 = vmatprep.subr.mxu0 %v2354_v0  ;;  %v1403_v21 = vld [vmem:[#allocation2 + $0xdf8] sm:$0xff] }
 0x227   :  { %v863_v23 = vadd.f32 %v2017_v6, %v650_v19  ;;  %2238 = vmatpush3.msra.mxu0 %v1041_v22  ;;  %v1404_v19 = vld [vmem:[#allocation2 + $0xe00] sm:$0xff]  ;;  %v1401_v22 = vld [vmem:[#allocation2 + $0xde8] sm:$0xff] }
 0x228   :  { %2239 = vmatprep.subr.mxu0 %v2354_v0  ;;  %v1400_v6 = vld [vmem:[#allocation2 + $0xde0] sm:$0xff] }
 0x229   :  { %v933_v24 = vadd.f32 %v932_v62, %v863_v23  ;;  %2240 = vmatpush3.msra.mxu0 %v1038_v9  ;;  %v1433_v62 = vld [vmem:[#allocation2 + $0xee8] sm:$0xff]  ;;  %v1398_v9 = vld [vmem:[#allocation2 + $0xdd0] sm:$0xff] }
 0x22a   :  { %v1397_v23 = vld [vmem:[#allocation2 + $0xdc8] sm:$0xff] }
 0x22b   :  { %v938_v25 = vmax.f32 %v933_v24, 0.0  ;;  %v1395_v24 = vld [vmem:[#allocation2 + $0xdb8] sm:$0xff] }
 0x22d   :  { %1238 = vmatmul.mubr.f32.vlgmr.msra.gmra.mxu1 %v938_v25  ;;  %2242 = vmatmul.mubr.f32.vlgmr.msra.gmra.mxu0 %v938_v25  ;;  %v1394_v25 = vld [vmem:[#allocation2 + $0xdb0] sm:$0xff] }
 0x22e   :  { %2036 = vmatpush3.msra.mxu1 %v987_v26  ;;  %1308 = vmatprep.mubr.f32.mxu1 %v937_v59  ;;  %v1434_v59 = vld [vmem:[#allocation2 + $0xef0] sm:$0xff]  ;;  %v1392_v26 = vld [vmem:[#allocation2 + $0xda0] sm:$0xff] }
 0x22f   :  { %2037 = vmatprep.subr.mxu1 %v1032_v27  ;;  %1685 = vmatprep.mubr.f32.mxu0 %v2354_v0  ;;  %v1391_v27 = vld [vmem:[#allocation2 + $0xd98] sm:$0xff] }
 0x230   :  { %2038 = vmatpush3.msra.mxu1 %v984_v28  ;;  %v1389_v28 = vld [vmem:[#allocation2 + $0xd88] sm:$0xff] }
 0x231   :  { %2039 = vmatprep.subr.mxu1 %v1029_v29  ;;  %v1388_v29 = vld [vmem:[#allocation2 + $0xd80] sm:$0xff] }
 0x232   :  { %2040 = vmatpush3.msra.mxu1 %v981_v30  ;;  %v1482_v30 = vld [vmem:[#allocation2 + $0x1070] sm:$0xff] }
 0x233   :  { %2041 = vmatprep.subr.mxu1 %v1026_v31  ;;  %v1481_v31 = vld [vmem:[#allocation2 + $0x1068] sm:$0xff] }
 0x234   :  { %2042 = vmatpush3.msra.mxu1 %v978_v32  ;;  %v1479_v32 = vld [vmem:[#allocation2 + $0x1058] sm:$0xff] }
 0x235   :  { %2043 = vmatprep.subr.mxu1 %v1023_v33  ;;  %v1478_v33 = vld [vmem:[#allocation2 + $0x1050] sm:$0xff] }
 0x236   :  { %2044 = vmatpush3.msra.mxu1 %v975_v34  ;;  %v1476_v34 = vld [vmem:[#allocation2 + $0x1040] sm:$0xff] }
 0x237   :  { %2045 = vmatprep.subr.mxu1 %v1020_v35  ;;  %v1475_v35 = vld [vmem:[#allocation2 + $0x1038] sm:$0xff] }
 0x238   :  { %2046 = vmatpush3.msra.mxu1 %v972_v36  ;;  %v1473_v36 = vld [vmem:[#allocation2 + $0x1028] sm:$0xff] }
 0x239   :  { %2047 = vmatprep.subr.mxu1 %v1017_v37  ;;  %v1472_v37 = vld [vmem:[#allocation2 + $0x1020] sm:$0xff] }
 0x23a   :  { %2048 = vmatpush3.msra.mxu1 %v969_v38  ;;  %v1470_v38 = vld [vmem:[#allocation2 + $0x1010] sm:$0xff] }
 0x23b   :  { %2049 = vmatprep.subr.mxu1 %v1014_v39  ;;  %v1469_v39 = vld [vmem:[#allocation2 + $0x1008] sm:$0xff] }
 0x23c   :  { %2050 = vmatpush3.msra.mxu1 %v966_v40  ;;  %v1467_v40 = vld [vmem:[#allocation2 + $0xff8] sm:$0xff] }
 0x23d   :  { %2051 = vmatprep.subr.mxu1 %v1011_v41  ;;  %v1466_v41 = vld [vmem:[#allocation2 + $0xff0] sm:$0xff] }
 0x23e   :  { %2052 = vmatpush3.msra.mxu1 %v963_v42  ;;  %v1530_v42 = vld [vmem:[#allocation2 + $0x11f0] sm:$0xff] }
 0x23f   :  { %2053 = vmatprep.subr.mxu1 %v1008_v43  ;;  %v1529_v43 = vld [vmem:[#allocation2 + $0x11e8] sm:$0xff]  ;;  %1621 = vmatprep.subr.mxu0 %v1530_v42 }
 0x240   :  { %2054 = vmatpush3.msra.mxu1 %v960_v44  ;;  %v1527_v44 = vld [vmem:[#allocation2 + $0x11d8] sm:$0xff]  ;;  %1622 = vmatpush1.msra.mxu0 %v1529_v43 }
 0x241   :  { %2055 = vmatprep.subr.mxu1 %v1005_v45  ;;  %v1464_v45 = vld [vmem:[#allocation2 + $0xfe0] sm:$0xff]  ;;  %1623 = vmatprep.subr.mxu0 %v1527_v44 }
 0x242   :  { %2056 = vmatpush3.msra.mxu1 %v957_v46  ;;  %v1526_v46 = vld [vmem:[#allocation2 + $0x11d0] sm:$0xff] }
 0x243   :  { %2057 = vmatprep.subr.mxu1 %v1002_v47  ;;  %v1463_v47 = vld [vmem:[#allocation2 + $0xfd8] sm:$0xff]  ;;  %1624 = vmatpush1.msra.mxu0 %v1526_v46 }
 0x244   :  { %2058 = vmatpush3.msra.mxu1 %v954_v48  ;;  %v1524_v48 = vld [vmem:[#allocation2 + $0x11c0] sm:$0xff] }
 0x245   :  { %2059 = vmatprep.subr.mxu1 %v999_v49  ;;  %v1461_v49 = vld [vmem:[#allocation2 + $0xfc8] sm:$0xff]  ;;  %1625 = vmatprep.subr.mxu0 %v1524_v48 }
 0x246   :  { %2060 = vmatpush3.msra.mxu1 %v951_v50  ;;  %v1523_v50 = vld [vmem:[#allocation2 + $0x11b8] sm:$0xff] }
 0x247   :  { %2061 = vmatprep.subr.mxu1 %v996_v51  ;;  %v1460_v51 = vld [vmem:[#allocation2 + $0xfc0] sm:$0xff]  ;;  %1626 = vmatpush1.msra.mxu0 %v1523_v50 }
 0x248   :  { %2062 = vmatpush3.msra.mxu1 %v948_v13  ;;  %v1521_v13 = vld [vmem:[#allocation2 + $0x11a8] sm:$0xff] }
 0x249   :  { %2063 = vmatprep.subr.mxu1 %v993_v52  ;;  %v1458_v52 = vld [vmem:[#allocation2 + $0xfb0] sm:$0xff]  ;;  %1627 = vmatprep.subr.mxu0 %v1521_v13  ;;  %v1528_v13 = vld [vmem:[#allocation2 + $0x11e0] sm:$0xff] }
 0x24a   :  { %2064 = vmatpush3.msra.mxu1 %v945_v53  ;;  %v1520_v53 = vld [vmem:[#allocation2 + $0x11a0] sm:$0xff] }
 0x24b   :  { %2065 = vmatprep.subr.mxu1 %v990_v55  ;;  %v1457_v55 = vld [vmem:[#allocation2 + $0xfa8] sm:$0xff]  ;;  %1628 = vmatpush1.msra.mxu0 %v1520_v53  ;;  %v1522_v53 = vld [vmem:[#allocation2 + $0x11b0] sm:$0xff] }
 0x24c   :  { %2066 = vmatpush3.msra.mxu1 %v942_v57  ;;  %v1518_v57 = vld [vmem:[#allocation2 + $0x1190] sm:$0xff] }
 0x24d   :  { %1309 = vmatmul.mubr.f32.vlgmr.msra.gmra.mxu1 %v936_v61  ;;  %1550 = vmatprep.subr.mxu1 %v1434_v59  ;;  %v1415_v61 = vld [vmem:[#allocation2 + $0xe58] sm:$0xff] }
 0x24e   :  { %1551 = vmatpush1.msra.mxu1 %v1433_v62  ;;  %v1455_v59 = vld [vmem:[#allocation2 + $0xf98] sm:$0xff]  ;;  %v1517_v62 = vld [vmem:[#allocation2 + $0x1188] sm:$0xff]  ;;  %1629 = vmatprep.subr.mxu0 %v1518_v57  ;;  %v1516_v57 = vld [vmem:[#allocation2 + $0x1180] sm:$0xff] }
 0x24f   :  { %1552 = vmatprep.subr.mxu1 %v1431_v63  ;;  %v1454_v63 = vld [vmem:[#allocation2 + $0xf90] sm:$0xff]  ;;  %1630 = vmatpush1.msra.mxu0 %v1517_v62 }
 0x250   :  { %1553 = vmatpush1.msra.mxu1 %v1430_v1  ;;  %v1515_v1 = vld [vmem:[#allocation2 + $0x1178] sm:$0xff]  ;;  %v1510_v62 = vld [vmem:[#allocation2 + $0x1150] sm:$0xff] }
 0x251   :  { %1554 = vmatprep.subr.mxu1 %v1428_v2  ;;  %v1452_v2 = vld [vmem:[#allocation2 + $0xf80] sm:$0xff]  ;;  %1631 = vmatprep.subr.mxu0 %v1515_v1 }
 0x252   :  { %1555 = vmatpush1.msra.mxu1 %v1427_v3  ;;  %v1514_v3 = vld [vmem:[#allocation2 + $0x1170] sm:$0xff]  ;;  %v1504_v1 = vld [vmem:[#allocation2 + $0x1120] sm:$0xff] }
 0x253   :  { %1556 = vmatprep.subr.mxu1 %v1425_v4  ;;  %v1451_v4 = vld [vmem:[#allocation2 + $0xf78] sm:$0xff]  ;;  %1632 = vmatpush1.msra.mxu0 %v1514_v3  ;;  %v1498_v3 = vld [vmem:[#allocation2 + $0x10f0] sm:$0xff] }
 0x254   :  { %1557 = vmatpush1.msra.mxu1 %v1424_v5  ;;  %v1512_v5 = vld [vmem:[#allocation2 + $0x1160] sm:$0xff] }
 0x255   :  { %1558 = vmatprep.subr.mxu1 %v1422_v7  ;;  %v1449_v7 = vld [vmem:[#allocation2 + $0xf68] sm:$0xff]  ;;  %1633 = vmatprep.subr.mxu0 %v1512_v5 }
 0x256   :  { %1559 = vmatpush1.msra.mxu1 %v1421_v8  ;;  %v1511_v8 = vld [vmem:[#allocation2 + $0x1158] sm:$0xff] }
 0x257   :  { %1560 = vmatprep.subr.mxu1 %v1419_v10  ;;  %v1448_v10 = vld [vmem:[#allocation2 + $0xf60] sm:$0xff]  ;;  %1634 = vmatpush1.msra.mxu0 %v1511_v8 }
 0x258   :  { %1561 = vmatpush1.msra.mxu1 %v1418_v11  ;;  %v1509_v11 = vld [vmem:[#allocation2 + $0x1148] sm:$0xff] }
 0x259   :  { %1562 = vmatprep.subr.mxu1 %v1416_v54  ;;  %v1446_v54 = vld [vmem:[#allocation2 + $0xf50] sm:$0xff]  ;;  %1635 = vmatprep.subr.mxu0 %v1509_v11  ;;  %v1489_v11 = vld [vmem:[#allocation2 + $0x10a8] sm:$0xff] }
 0x25a   :  { %1563 = vmatpush1.msra.mxu1 %v1415_v61  ;;  %v1508_v61 = vld [vmem:[#allocation2 + $0x1140] sm:$0xff] }
 0x25b   :  { %1564 = vmatprep.subr.mxu1 %v1413_v12  ;;  %v1445_v12 = vld [vmem:[#allocation2 + $0xf48] sm:$0xff]  ;;  %1636 = vmatpush1.msra.mxu0 %v1508_v61  ;;  %v1486_v61 = vld [vmem:[#allocation2 + $0x1090] sm:$0xff] }
 0x25c   :  { %1565 = vmatpush1.msra.mxu1 %v1412_v14  ;;  %v1506_v14 = vld [vmem:[#allocation2 + $0x1130] sm:$0xff] }
 0x25d   :  { %1566 = vmatprep.subr.mxu1 %v1410_v15  ;;  %v1443_v15 = vld [vmem:[#allocation2 + $0xf38] sm:$0xff]  ;;  %1637 = vmatprep.subr.mxu0 %v1506_v14 }
 0x25e   :  { %1567 = vmatpush1.msra.mxu1 %v1409_v16  ;;  %v1505_v16 = vld [vmem:[#allocation2 + $0x1128] sm:$0xff] }
 0x25f   :  { %1568 = vmatprep.subr.mxu1 %v1407_v17  ;;  %v1442_v17 = vld [vmem:[#allocation2 + $0xf30] sm:$0xff]  ;;  %1638 = vmatpush1.msra.mxu0 %v1505_v16  ;;  %v1435_v16 = vld [vmem:[#allocation2 + $0xef8] sm:$0xff] }
 0x260   :  { %1569 = vmatpush1.msra.mxu1 %v1406_v18  ;;  %v1503_v18 = vld [vmem:[#allocation2 + $0x1118] sm:$0xff] }
 0x261   :  { %1570 = vmatprep.subr.mxu1 %v1404_v19  ;;  %v1440_v19 = vld [vmem:[#allocation2 + $0xf20] sm:$0xff]  ;;  %1639 = vmatprep.subr.mxu0 %v1503_v18 }
 0x262   :  { %1571 = vmatpush1.msra.mxu1 %v1403_v21  ;;  %v1502_v21 = vld [vmem:[#allocation2 + $0x1110] sm:$0xff]  ;;  %v1432_v18 = vld [vmem:[#allocation2 + $0xee0] sm:$0xff] }
 0x263   :  { %1572 = vmatprep.subr.mxu1 %v1401_v22  ;;  %v1439_v22 = vld [vmem:[#allocation2 + $0xf18] sm:$0xff]  ;;  %1640 = vmatpush1.msra.mxu0 %v1502_v21  ;;  %v1429_v21 = vld [vmem:[#allocation2 + $0xec8] sm:$0xff] }
 0x264   :  { %1573 = vmatpush1.msra.mxu1 %v1400_v6  ;;  %v1500_v6 = vld [vmem:[#allocation2 + $0x1100] sm:$0xff] }
 0x265   :  { %1574 = vmatprep.subr.mxu1 %v1398_v9  ;;  %v1437_v9 = vld [vmem:[#allocation2 + $0xf08] sm:$0xff]  ;;  %1641 = vmatprep.subr.mxu0 %v1500_v6  ;;  %v1426_v6 = vld [vmem:[#allocation2 + $0xeb0] sm:$0xff] }
 0x266   :  { %1575 = vmatpush1.msra.mxu1 %v1397_v23  ;;  %v1499_v23 = vld [vmem:[#allocation2 + $0x10f8] sm:$0xff] }
 0x267   :  { %1576 = vmatprep.subr.mxu1 %v1395_v24  ;;  %v1436_v24 = vld [vmem:[#allocation2 + $0xf00] sm:$0xff]  ;;  %1642 = vmatpush1.msra.mxu0 %v1499_v23 }
 0x268   :  { %1577 = vmatpush1.msra.mxu1 %v1394_v25  ;;  %v1497_v25 = vld [vmem:[#allocation2 + $0x10e8] sm:$0xff]  ;;  %v1468_v23 = vld [vmem:[#allocation2 + $0x1000] sm:$0xff] }
 0x269   :  { %1578 = vmatprep.subr.mxu1 %v1392_v26  ;;  %1643 = vmatprep.subr.mxu0 %v1497_v25  ;;  %v1496_v26 = vld [vmem:[#allocation2 + $0x10e0] sm:$0xff]  ;;  %v1465_v25 = vld [vmem:[#allocation2 + $0xfe8] sm:$0xff] }
 0x26a   :  { %1579 = vmatpush1.msra.mxu1 %v1391_v27  ;;  %1644 = vmatpush1.msra.mxu0 %v1496_v26  ;;  %v1494_v27 = vld [vmem:[#allocation2 + $0x10d0] sm:$0xff]  ;;  %v1417_v26 = vld [vmem:[#allocation2 + $0xe68] sm:$0xff] }
 0x26b   :  { %1580 = vmatprep.subr.mxu1 %v1389_v28  ;;  %1645 = vmatprep.subr.mxu0 %v1494_v27  ;;  %v1493_v28 = vld [vmem:[#allocation2 + $0x10c8] sm:$0xff]  ;;  %v1462_v27 = vld [vmem:[#allocation2 + $0xfd0] sm:$0xff] }
 0x26c   :  { %1581 = vmatpush1.msra.mxu1 %v1388_v29  ;;  %1646 = vmatpush1.msra.mxu0 %v1493_v28  ;;  %v1491_v29 = vld [vmem:[#allocation2 + $0x10b8] sm:$0xff]  ;;  %v1414_v28 = vld [vmem:[#allocation2 + $0xe50] sm:$0xff] }
 0x26d   :  { %1582 = vmatprep.subr.mxu1 %v1482_v30  ;;  %1647 = vmatprep.subr.mxu0 %v1491_v29  ;;  %v1490_v30 = vld [vmem:[#allocation2 + $0x10b0] sm:$0xff]  ;;  %v1459_v29 = vld [vmem:[#allocation2 + $0xfb8] sm:$0xff] }
 0x26e   :  { %1583 = vmatpush2.msra.mxu1 %v1481_v31  ;;  %1648 = vmatpush1.msra.mxu0 %v1490_v30  ;;  %v1488_v31 = vld [vmem:[#allocation2 + $0x10a0] sm:$0xff]  ;;  %v1411_v30 = vld [vmem:[#allocation2 + $0xe38] sm:$0xff] }
 0x26f   :  { %1584 = vmatprep.subr.mxu1 %v1479_v32  ;;  %1649 = vmatprep.subr.mxu0 %v1488_v31  ;;  %v1487_v32 = vld [vmem:[#allocation2 + $0x1098] sm:$0xff]  ;;  %v1456_v31 = vld [vmem:[#allocation2 + $0xfa0] sm:$0xff] }
 0x270   :  { %1585 = vmatpush2.msra.mxu1 %v1478_v33  ;;  %1650 = vmatpush1.msra.mxu0 %v1487_v32  ;;  %v1485_v33 = vld [vmem:[#allocation2 + $0x1088] sm:$0xff]  ;;  %v1408_v32 = vld [vmem:[#allocation2 + $0xe20] sm:$0xff] }
 0x271   :  { %1586 = vmatprep.subr.mxu1 %v1476_v34  ;;  %1651 = vmatprep.subr.mxu0 %v1485_v33  ;;  %v1484_v34 = vld [vmem:[#allocation2 + $0x1080] sm:$0xff]  ;;  %v1453_v33 = vld [vmem:[#allocation2 + $0xf88] sm:$0xff] }
 0x272   :  { %1587 = vmatpush2.msra.mxu1 %v1475_v35  ;;  %1652 = vmatpush1.msra.mxu0 %v1484_v34  ;;  %v1483_v35 = vld [vmem:[#allocation2 + $0x1078] sm:$0xff]  ;;  %v1405_v34 = vld [vmem:[#allocation2 + $0xe08] sm:$0xff] }
 0x273   :  { %1588 = vmatprep.subr.mxu1 %v1473_v36  ;;  %2087 = vmatprep.subr.mxu0 %v1483_v35  ;;  %v2505_v36 = vld [vmem:[#allocation4 + $0x6] sm:$0x7]  ;;  %v1450_v35 = vld [vmem:[#allocation2 + $0xf70] sm:$0xff] }
 0x274   :  { %1589 = vmatpush2.msra.mxu1 %v1472_v37  ;;  %v1098_v8 = vrot.slane %v2505_v36, %v2446_v20 }
 0x275   :  { %1590 = vmatprep.subr.mxu1 %v1470_v38  ;;  %v1090_v38 = vrot.slane %v2505_v36, %v2422_v58 }
 0x276   :  { %1591 = vmatpush2.msra.mxu1 %v1469_v39  ;;  %v1094_v39 = vrot.slane %v2505_v36, %v2424_v60  ;;  %v1402_v36 = vld [vmem:[#allocation2 + $0xdf0] sm:$0xff] }
 0x277   :  { %1592 = vmatprep.subr.mxu1 %v1467_v40 }
 0x278   :  { %1593 = vmatpush2.msra.mxu1 %v1466_v41 }
 0x279   :  { %1594 = vmatprep.subr.mxu1 %v1464_v45 }
 0x27a   :  { %1595 = vmatpush2.msra.mxu1 %v1463_v47 }
 0x27b   :  { %1596 = vmatprep.subr.mxu1 %v1461_v49 }
 0x27c   :  { %1597 = vmatpush2.msra.mxu1 %v1460_v51  ;;  %v1531_v51 = vld [vmem:[#allocation2 + $0x11f8] sm:$0xff] }
 0x27d   :  { %1598 = vmatprep.subr.mxu1 %v1458_v52  ;;  %v1525_v52 = vld [vmem:[#allocation2 + $0x11c8] sm:$0xff] }
 0x27e   :  { %1599 = vmatpush2.msra.mxu1 %v1457_v55  ;;  %v1519_v55 = vld [vmem:[#allocation2 + $0x1198] sm:$0xff] }
 0x27f   :  { %1600 = vmatprep.subr.mxu1 %v1455_v59  ;;  %v1513_v59 = vld [vmem:[#allocation2 + $0x1168] sm:$0xff] }
 0x280   :  { %1601 = vmatpush2.msra.mxu1 %v1454_v63  ;;  %v1507_v63 = vld [vmem:[#allocation2 + $0x1138] sm:$0xff] }
 0x281   :  { %1602 = vmatprep.subr.mxu1 %v1452_v2  ;;  %v1501_v2 = vld [vmem:[#allocation2 + $0x1108] sm:$0xff] }
 0x282   :  { %1603 = vmatpush2.msra.mxu1 %v1451_v4  ;;  %v1495_v4 = vld [vmem:[#allocation2 + $0x10d8] sm:$0xff] }
 0x283   :  { %1604 = vmatprep.subr.mxu1 %v1449_v7  ;;  %v1492_v7 = vld [vmem:[#allocation2 + $0x10c0] sm:$0xff] }
 0x284   :  { %1605 = vmatpush2.msra.mxu1 %v1448_v10 }
 0x285   :  { %1606 = vmatprep.subr.mxu1 %v1446_v54 }
 0x286   :  { %1607 = vmatpush2.msra.mxu1 %v1445_v12 }
 0x287   :  { %1608 = vmatprep.subr.mxu1 %v1443_v15 }
 0x288   :  { %1609 = vmatpush2.msra.mxu1 %v1442_v17  ;;  %v1480_v17 = vld [vmem:[#allocation2 + $0x1060] sm:$0xff] }
 0x289   :  { %1610 = vmatprep.subr.mxu1 %v1440_v19  ;;  %v1477_v19 = vld [vmem:[#allocation2 + $0x1048] sm:$0xff] }
 0x28a   :  { %1611 = vmatpush2.msra.mxu1 %v1439_v22  ;;  %v1474_v22 = vld [vmem:[#allocation2 + $0x1030] sm:$0xff] }
 0x28b   :  { %1612 = vmatprep.subr.mxu1 %v1437_v9  ;;  %v1423_v9 = vld [vmem:[#allocation2 + $0xe98] sm:$0xff] }
 0x28c   :  { %1613 = vmatpush2.msra.mxu1 %v1436_v24  ;;  %v1420_v24 = vld [vmem:[#allocation2 + $0xe80] sm:$0xff] }
 0x28d   :  { %2244 = vmatprep.subr.mxu1 %v2354_v0 }
 0x2ca   :  { %v1168_v37 = vpop.f32.mrf.mxu0 }
 0x2cb   :  { %v1169_v41 = vadd.f32 %v1168_v37, %v1090_v38  ;;  %v1447_v37 = vld [vmem:[#allocation2 + $0xf58] sm:$0xff] }
 0x2cc   :  { %v1170_v40 = vpop.f32.mrf.mxu0  ;;  %v1399_v38 = vld [vmem:[#allocation2 + $0xdd8] sm:$0xff] }
 0x2cd   :  { %v1171_v44 = vadd.f32 %v1170_v40, %v1094_v39  ;;  %v1444_v39 = vld [vmem:[#allocation2 + $0xf40] sm:$0xff] }
 0x2ce   :  { %v1396_v40 = vld [vmem:[#allocation2 + $0xdc0] sm:$0xff] }
 0x2ed   :  { %v1239_v42 = vpop.f32.mrf.mxu1  ;;  %v1380_v43 = vpop.f32.mrf.mxu0 }
 0x2ee   :  { %v2511_v45 = vadd.f32 %v1239_v42, %v1169_v41  ;;  %v1441_v41 = vld [vmem:[#allocation2 + $0xf28] sm:$0xff] }
 0x2ef   :  { %v1241_v46 = vpop.f32.mrf.mxu1  ;;  %v2243_v47 = vpop.f32.mrf.mxu0  ;;  %v1393_v42 = vld [vmem:[#allocation2 + $0xda8] sm:$0xff] }
 0x2f0   :  { %v2513_v48 = vadd.f32 %v1241_v46, %v1171_v44  ;;  %v1384_v50 = vmax.f32 %v2511_v45, 0.0  ;;  %v1390_v44 = vld [vmem:[#allocation2 + $0xd90] sm:$0xff]  ;;  %v1533_v46 = vld [vmem:[#allocation4 + $0x9] sm:$0x7] }
 0x2f2   :  { %v1385_v49 = vmax.f32 %v2513_v48, 0.0  ;;  %v1538_v48 = vrot.slane %v1533_v46, %v2422_v58 }
 0x2f4   :  { %1614 = vmatprep.mubr.f32.mxu1 %v1385_v49 }
 0x2f5   :  { %1615 = vmatmul.mubr.f32.vlgmr.msra.gmra.mxu1 %v1384_v50 }
 0x2f6   :  { %2245 = vmatpush3.msra.mxu1 %v1531_v51  ;;  %2276 = vmatprep.mubr.msk.f32.mxu1 %vm2355_vm0, %v2354_v0 }
 0x2f7   :  { %2246 = vmatprep.subr.mxu1 %v2354_v0 }
 0x2f8   :  { %2247 = vmatpush3.msra.mxu1 %v1528_v13 }
 0x2f9   :  { %2248 = vmatprep.subr.mxu1 %v2354_v0 }
 0x2fa   :  { %2249 = vmatpush3.msra.mxu1 %v1525_v52 }
 0x2fb   :  { %2250 = vmatprep.subr.mxu1 %v2354_v0 }
 0x2fc   :  { %2251 = vmatpush3.msra.mxu1 %v1522_v53 }
 0x2fd   :  { %2252 = vmatprep.subr.mxu1 %v2354_v0 }
 0x2fe   :  { %2253 = vmatpush3.msra.mxu1 %v1519_v55 }
 0x2ff   :  { %2254 = vmatprep.subr.mxu1 %v2354_v0 }
 0x300   :  { %2255 = vmatpush3.msra.mxu1 %v1516_v57 }
 0x301   :  { %2256 = vmatprep.subr.mxu1 %v2354_v0 }
 0x302   :  { %2257 = vmatpush3.msra.mxu1 %v1513_v59 }
 0x303   :  { %2258 = vmatprep.subr.mxu1 %v2354_v0 }
 0x304   :  { %2259 = vmatpush3.msra.mxu1 %v1510_v62 }
 0x305   :  { %2260 = vmatprep.subr.mxu1 %v2354_v0 }
 0x306   :  { %2261 = vmatpush3.msra.mxu1 %v1507_v63 }
 0x307   :  { %2262 = vmatprep.subr.mxu1 %v2354_v0 }
 0x308   :  { %2263 = vmatpush3.msra.mxu1 %v1504_v1 }
 0x309   :  { %2264 = vmatprep.subr.mxu1 %v2354_v0 }
 0x30a   :  { %2265 = vmatpush3.msra.mxu1 %v1501_v2 }
 0x30b   :  { %2266 = vmatprep.subr.mxu1 %v2354_v0 }
 0x30c   :  { %2267 = vmatpush3.msra.mxu1 %v1498_v3 }
 0x30d   :  { %v2067_v5 = vpop.f32.mrf.mxu1  ;;  %2268 = vmatprep.subr.mxu1 %v2354_v0 }
 0x30e   :  { %2269 = vmatpush3.msra.mxu1 %v1495_v4 }
 0x30f   :  { %v2068_v10 = vpop.f32.mrf.mxu1  ;;  %2270 = vmatprep.subr.mxu1 %v2354_v0 }
 0x310   :  { %v2069_v54 = vadd.f32 %v2068_v10, %v2067_v5  ;;  %2271 = vmatpush3.msra.mxu1 %v1492_v7 }
 0x311   :  { %2272 = vmatprep.subr.mxu1 %v2354_v0 }
 0x312   :  { %v1311_v12 = vadd.f32 %v2069_v54, %v1098_v8  ;;  %2273 = vmatpush3.msra.mxu1 %v1489_v11  ;;  %v1845_v54 = vand.u32 127, %v191_v56 }
 0x313   :  { %2274 = vmatprep.subr.mxu1 %v2354_v0  ;;  %v1471_v0 = vld [vmem:[#allocation2 + $0x1018] sm:$0xff] }
 0x314   :  { %v1381_v14 = vadd.f32 %v1380_v43, %v1311_v12  ;;  %2275 = vmatpush3.msra.mxu1 %v1486_v61  ;;  %v1438_v43 = vld [vmem:[#allocation2 + $0xf10] sm:$0xff]  ;;  %vm1846_vm1 = vcmp.lt.s32.totalorder %v1845_v54, 51 }
 0x316   :  { %v1386_v15 = vmax.f32 %v1381_v14, 0.0 }
 0x318   :  { %1686 = vmatmul.mubr.f32.vlgmr.msra.gmra.mxu0 %v1386_v15  ;;  %2277 = vmatmul.mubr.f32.vlgmr.msra.gmra.mxu1 %v1386_v15 }
 0x319   :  { %2088 = vmatpush3.msra.mxu0 %v1435_v16  ;;  %1756 = vmatprep.mubr.f32.mxu0 %v1385_v49  ;;  %v1542_v49 = vrot.slane %v1533_v46, %v2424_v60 }
 0x31a   :  { %2089 = vmatprep.subr.mxu0 %v1480_v17 }
 0x31b   :  { %2090 = vmatpush3.msra.mxu0 %v1432_v18 }
 0x31c   :  { %2091 = vmatprep.subr.mxu0 %v1477_v19 }
 0x31d   :  { %2092 = vmatpush3.msra.mxu0 %v1429_v21 }
 0x31e   :  { %2093 = vmatprep.subr.mxu0 %v1474_v22 }
 0x31f   :  { %2094 = vmatpush3.msra.mxu0 %v1426_v6 }
 0x320   :  { %2095 = vmatprep.subr.mxu0 %v1471_v0 }
 0x321   :  { %2096 = vmatpush3.msra.mxu0 %v1423_v9 }
 0x322   :  { %2097 = vmatprep.subr.mxu0 %v1468_v23 }
 0x323   :  { %2098 = vmatpush3.msra.mxu0 %v1420_v24 }
 0x324   :  { %2099 = vmatprep.subr.mxu0 %v1465_v25 }
 0x325   :  { %2100 = vmatpush3.msra.mxu0 %v1417_v26 }
 0x326   :  { %2101 = vmatprep.subr.mxu0 %v1462_v27 }
 0x327   :  { %2102 = vmatpush3.msra.mxu0 %v1414_v28 }
 0x328   :  { %2103 = vmatprep.subr.mxu0 %v1459_v29 }
 0x329   :  { %2104 = vmatpush3.msra.mxu0 %v1411_v30 }
 0x32a   :  { %2105 = vmatprep.subr.mxu0 %v1456_v31 }
 0x32b   :  { %2106 = vmatpush3.msra.mxu0 %v1408_v32 }
 0x32c   :  { %2107 = vmatprep.subr.mxu0 %v1453_v33 }
 0x32d   :  { %2108 = vmatpush3.msra.mxu0 %v1405_v34 }
 0x32e   :  { %2109 = vmatprep.subr.mxu0 %v1450_v35 }
 0x32f   :  { %2110 = vmatpush3.msra.mxu0 %v1402_v36 }
 0x330   :  { %2111 = vmatprep.subr.mxu0 %v1447_v37 }
 0x331   :  { %2112 = vmatpush3.msra.mxu0 %v1399_v38 }
 0x332   :  { %2113 = vmatprep.subr.mxu0 %v1444_v39 }
 0x333   :  { %2114 = vmatpush3.msra.mxu0 %v1396_v40 }
 0x334   :  { %2115 = vmatprep.subr.mxu0 %v1441_v41 }
 0x335   :  { %2116 = vmatpush3.msra.mxu0 %v1393_v42 }
 0x336   :  { %2117 = vmatprep.subr.mxu0 %v1438_v43 }
 0x337   :  { %2118 = vmatpush3.msra.mxu0 %v1390_v44 }
 0x338   :  { %1757 = vmatmul.mubr.f32.vlgmr.msra.gmra.mxu0 %v1384_v50  ;;  %v1546_v50 = vrot.slane %v1533_v46, %v2446_v20 }
 0x3b5   :  { %v1616_v47 = vpop.f32.mrf.mxu1 }
 0x3b6   :  { %v1617_v13 = vadd.f32 %v1616_v47, %v1538_v48 }
 0x3b7   :  { %v1618_v51 = vpop.f32.mrf.mxu1 }
 0x3b8   :  { %v1619_v55 = vadd.f32 %v1618_v51, %v1542_v49 }
 0x3d8   :  { %v1687_v52 = vpop.f32.mrf.mxu0  ;;  %v1828_v53 = vpop.f32.mrf.mxu1 }
 0x3d9   :  { %v1688_v57 = vadd.f32 %v1687_v52, %v1617_v13 }
 0x3da   :  { %v1689_v59 = vpop.f32.mrf.mxu0  ;;  %v2278_v62 = vpop.f32.mrf.mxu1 }
 0x3db   :  { %v1690_v63 = vadd.f32 %v1689_v59, %v1619_v55  ;;  %1848 = vrot.lane.b32.xlu1 %v1688_v57, %s2356_s0 }
 0x3dd   :  { %1833 = vrot.lane.b32.xlu0 %v1690_v63, %s2356_s0  ;;  %v1872_v61 = vadd.f32 %v1690_v63, %v1688_v57 }
 0x3f8   :  { %v2119_v45 = vpop.f32.mrf.mxu0 }
 0x3fa   :  { %v2120_v1 = vpop.f32.mrf.mxu0 }
 0x3fb   :  { %v2121_v2 = vadd.f32 %v2120_v1, %v2119_v45 }
 0x3fd   :  { %v1759_v58 = vadd.f32 %v2121_v2, %v1546_v50 }
 0x3ff   :  { %v1829_v3 = vadd.f32 %v1828_v53, %v1759_v58 }
 0x401   :  { %1839 = vrot.lane.b32.xlu0 %v1829_v3, %s2356_s0  ;;  %v1905_v19 = vadd.f32 %v1829_v3, %v1688_v57 }
 0x44d   :  { %v1849_v11 = vpop.permute.xlu1 %1848 }
 0x44e   :  { %v1851_v12 = vadd.f32 %v1849_v11, %v1688_v57 }
 0x44f   :  { %v1834_v60 = vpop.permute.xlu0 %1833 }
 0x450   :  { %v1836_v4 = vadd.f32 %v1834_v60, %v1688_v57 }
 0x452   :  { %v1837_v5 = vadd.f32 %v1836_v4, %v1690_v63 }
 0x473   :  { %v1840_v7 = vpop.permute.xlu0 %1839 }
 0x474   :  { %v1842_v8 = vadd.f32 %v1840_v7, %v1837_v5 }
 0x476   :  { %v1843_v10 = vmul.f32 0.25, %v1842_v8 }
 0x478   :  { %1853 = vrot.lane.b32.xlu1 %v1843_v10, %s2356_s0 }
 0x4ea   :  { %v1854_v14 = vpop.permute.xlu1 %1853 }
 0x4eb   :  { %v1873_v20 = vsub.f32 %v1872_v61, %v1854_v14  ;;  %v1856_v15 = vsub.f32 %v1851_v12, %v1854_v14  ;;  %v1889_v16 = vsub.f32 %v1836_v4, %v1854_v14  ;;  %v1906_v6 = vsub.f32 %v1905_v19, %v1854_v14 }
 0x4ed   :  { %v1874_v17 = vsel %vm1846_vm1, %v1873_v20, -1e+30  ;;  %v1857_v18 = vsel %vm1846_vm1, %v1856_v15, -1e+30  ;;  %v1890_v56 = vsel %vm1846_vm1, %v1889_v16, -1e+30 }
 0x4ee   :  { %v1875_v21 = vsel %vm1858_vm2, %v1874_v17, -inf  ;;  %v1859_v22 = vsel %vm1858_vm2, %v1857_v18, -inf  ;;  %v1891_v0 = vsel %vm1858_vm2, %v1890_v56, -inf  ;;  %v1907_v9 = vsel %vm1846_vm1, %v1906_v6, -1e+30 }
 0x4ef   :  { %1876 = vmax.xlane.f32.xlu1 %v1875_v21  ;;  %1860 = vmax.xlane.f32.xlu0 %v1859_v22  ;;  %v1908_v23 = vsel %vm1858_vm2, %v1907_v9, -inf }
 0x4f3   :  { %1892 = vmax.xlane.f32.xlu0 %v1891_v0 }
 0x4f7   :  { %1909 = vmax.xlane.f32.xlu0 %v1908_v23 }
 0x578   :  { %v1877_v24 = vpop.xlane.xlu1 %1876  ;;  %v1861_v25 = vpop.xlane.xlu0 %1860 }
 0x579   :  { %v1878_v26 = vsub.f32 %v1874_v17, %v1877_v24  ;;  %v1862_v27 = vsub.f32 %v1857_v18, %v1861_v25 }
 0x57b   :  { %v1879_v28 = vmul.f32 1.442695, %v1878_v26  ;;  %v1863_v29 = vmul.f32 1.442695, %v1862_v27 }
 0x57c   :  { %v1893_v30 = vpop.xlane.xlu0 %1892 }
 0x57d   :  { %2288 = vpow2.f32 %v1879_v28  ;;  %v1894_v31 = vsub.f32 %v1890_v56, %v1893_v30 }
 0x57e   :  { %2290 = vpow2.f32 %v1863_v29 }
 0x57f   :  { %v1895_v32 = vmul.f32 1.442695, %v1894_v31 }
 0x580   :  { %v1910_v33 = vpop.xlane.xlu0 %1909 }
 0x581   :  { %2292 = vpow2.f32 %v1895_v32  ;;  %v1911_v34 = vsub.f32 %v1907_v9, %v1910_v33 }
 0x583   :  { %v1912_v35 = vmul.f32 1.442695, %v1911_v34 }
 0x585   :  { %2294 = vpow2.f32 %v1912_v35 }
 0x58a   :  { %v2289_v36 = vpop.eup %2288 }
 0x58b   :  { %v2291_v37 = vpop.eup %2290  ;;  %v1881_v38 = vsel %vm1846_vm1, %v2289_v36, 0.0 }
 0x58c   :  { %v1882_v39 = vsel %vm1858_vm2, %v1881_v38, 0.0  ;;  %v1865_v40 = vsel %vm1846_vm1, %v2291_v37, 0.0 }
 0x58d   :  { %1883 = vadd.xlane.f32.xlu0 %v1882_v39  ;;  %v1866_v41 = vsel %vm1858_vm2, %v1865_v40, 0.0 }
 0x58e   :  { %v2293_v42 = vpop.eup %2292  ;;  %1867 = vadd.xlane.f32.xlu1 %v1866_v41 }
 0x58f   :  { %v1897_v43 = vsel %vm1846_vm1, %v2293_v42, 0.0 }
 0x590   :  { %v1898_v44 = vsel %vm1858_vm2, %v1897_v43, 0.0 }
 0x592   :  { %v2295_v46 = vpop.eup %2294  ;;  %1899 = vadd.xlane.f32.xlu1 %v1898_v44 }
 0x593   :  { %v1914_v47 = vsel %vm1846_vm1, %v2295_v46, 0.0 }
 0x594   :  { %v1915_v48 = vsel %vm1858_vm2, %v1914_v47, 0.0 }
 0x595   :  { %1916 = vadd.xlane.f32.xlu0 %v1915_v48 }
 0x616   :  { %v1884_v49 = vpop.xlane.xlu0 %1883 }
 0x617   :  { %v1868_v51 = vpop.xlane.xlu1 %1867  ;;  %2296 = vrcp.f32 %v1884_v49 }
 0x618   :  { %2298 = vrcp.f32 %v1868_v51 }
 0x61b   :  { %v1900_v13 = vpop.xlane.xlu1 %1899 }
 0x61c   :  { %2300 = vrcp.f32 %v1900_v13 }
 0x61e   :  { %v1917_v52 = vpop.xlane.xlu0 %1916 }
 0x61f   :  { %2302 = vrcp.f32 %v1917_v52 }
 0x624   :  { %v2297_v53 = vpop.eup %2296 }
 0x625   :  { %v2299_v55 = vpop.eup %2298  ;;  %v1886_v57 = vmul.f32 %v2297_v53, %v1881_v38 }
 0x626   :  { %v1870_v59 = vmul.f32 %v2299_v55, %v1865_v40 }
 0x627   :  { %1928 = vst.msk [vmem:[%s2583_s3 + $0x8] sm:$0xff] %vm1858_vm2, %v1886_v57 }
 0x628   :  { %1871 = vst.msk [vmem:[%s2583_s3] sm:$0xff] %vm1858_vm2, %v1870_v59 }
 0x629   :  { %v2301_v62 = vpop.eup %2300 }
 0x62a   :  { %v1902_v63 = vmul.f32 %v2301_v62, %v1897_v43 }
 0x62c   :  { %v2303_v45 = vpop.eup %2302  ;;  %1929 = vst.msk [vmem:[%s2583_s3 + $0x10] sm:$0xff] %vm1858_vm2, %v1902_v63 }
 0x62d   :  { %v1919_v50 = vmul.f32 %v2303_v45, %v1914_v47 }
 0x62f   :  { %1930 = vst.msk [vmem:[%s2583_s3 + $0x18] sm:$0xff] %vm1858_vm2, %v1919_v50 }
 0x630   :  { %1926 = vsyncpa [#allocation3], 1 }
 0x631   :  { %1927 = vsyncpa [#allocation5], 1 }

</bundles_post_ra>
